<compile_context>
chip_gen: v6e
topology: v6e:2x2x1
jax: 0.10.0
libtpu: 0.0.40
codegen_flags: <defaults>
</compile_context>

<pallas_src>
import functools

import jax
import jax.numpy as jnp
from jax.experimental import pallas as pl
from jax.experimental.pallas import tpu as pltpu

MAX_LENGTH = 50
_NEG = -1e30  # "-inf" pad bias so padded lanes vanish in softmax / log_softmax


def _round_up(x, m):
    return ((x + m - 1) // m) * m


def _attn_decoder_kernel(nhid, nlayers,
                         tok_ref,        # SMEM (T,) int32 scalar-prefetch tokens
                         emb_hbm,        # HBM  (nout, nhid) f32 embedding table
                         hid0_ref,       # VMEM (1, nhid) f32 initial hidden
                         enc_ref,        # VMEM (Lp, nhid) bf16 encoder outputs (zero padded)
                         attn_w_ref,     # VMEM (2*nhid, Lp) bf16
                         attn_b_ref,     # VMEM (1, Lp) f32 (pad lanes = -1e30)
                         comb_w_ref,     # VMEM (2*nhid, nhid) bf16
                         comb_b_ref,     # VMEM (1, nhid) f32
                         gru_wi_ref,     # VMEM (3, nhid, nhid) bf16, gate order [r, z, n]
                         gru_wh_ref,     # VMEM (3, nhid, nhid) bf16
                         gru_bi_ref,     # VMEM (3, 1, nhid) f32
                         gru_bh_ref,     # VMEM (3, 1, nhid) f32
                         out_w_ref,      # VMEM (nhid, Vp) bf16
                         out_b_ref,      # VMEM (1, Vp) f32 (pad lanes = -1e30)
                         logp_ref,       # out VMEM (1, 1, Vp) f32
                         hid_out_ref,    # out VMEM (1, 1, nhid) f32
                         attn_out_ref,   # out VMEM (1, 1, Lp) f32
                         h_state,        # scratch VMEM (1, nhid) f32 (carried hidden)
                         emb_row,        # scratch VMEM (1, nhid) f32 (gathered row)
                         emb_sem):       # scratch DMA semaphore (1,)
    H = nhid
    t = pl.program_id(0)

    # --- gather this step's embedding row straight from HBM (no full-table DMA).
    tok = tok_ref[t]
    row_cp = pltpu.make_async_copy(emb_hbm.at[pl.ds(tok, 1), :], emb_row,
                                   emb_sem.at[0])
    row_cp.start()

    # --- carried hidden state: initialise from the provided hidden on step 0.
    @pl.when(t == 0)
    def _():
        h_state[...] = hid0_ref[...]

    hidden = h_state[...]                                    # (1, H) f32
    hidden_bf = hidden.astype(jnp.bfloat16)

    # attention logits: cat(embedded, hidden) @ W_attn + b
    #   == embedded @ W[:H] + hidden @ W[H:]   (split concat; no lane shuffles)
    logits_h = jnp.dot(hidden_bf, attn_w_ref[H:, :],
                       preferred_element_type=jnp.float32)   # overlaps the row DMA
    row_cp.wait()
    embedded = emb_row[...].astype(jnp.bfloat16)             # (1, H)
    # TODO(synk): nn.Dropout(p=0.1) is identity in eval mode; training RNG dropout omitted.
    logits = (jnp.dot(embedded, attn_w_ref[:H, :],
                      preferred_element_type=jnp.float32)
              + logits_h + attn_b_ref[...])                  # (1, Lp); pad lanes = -1e30

    m = jnp.max(logits, axis=1, keepdims=True)
    e = jnp.exp(logits - m)                                   # pad lanes -> exactly 0
    probs = e * pl.reciprocal(jnp.sum(e, axis=1, keepdims=True), approx=True)
    attn_out_ref[0] = probs                                   # lane-dense (1, Lp) store

    # attn_applied = attn_weights @ encoder_outputs (padded rows are zero)
    attn_applied = jnp.dot(probs.astype(jnp.bfloat16), enc_ref[...],
                           preferred_element_type=jnp.float32)          # (1, H)

    # output = relu(cat(embedded, attn_applied) @ W_combine + b)
    output = (jnp.dot(embedded, comb_w_ref[:H, :],
                      preferred_element_type=jnp.float32)
              + jnp.dot(attn_applied.astype(jnp.bfloat16), comb_w_ref[H:, :],
                        preferred_element_type=jnp.float32)
              + comb_b_ref[...])
    output = jnp.maximum(output, 0.0)

    # nlayers applications of the SAME single-layer GRU — exactly the PyTorch
    # loop `for l in range(nlayers): output, hidden = self.gru(output, hidden)`.
    x = output
    h = hidden
    for _ in range(nlayers):
        xb = x.astype(jnp.bfloat16)
        hb = h.astype(jnp.bfloat16)
        i_r = jnp.dot(xb, gru_wi_ref[0], preferred_element_type=jnp.float32) + gru_bi_ref[0]
        i_z = jnp.dot(xb, gru_wi_ref[1], preferred_element_type=jnp.float32) + gru_bi_ref[1]
        i_n = jnp.dot(xb, gru_wi_ref[2], preferred_element_type=jnp.float32) + gru_bi_ref[2]
        h_r = jnp.dot(hb, gru_wh_ref[0], preferred_element_type=jnp.float32) + gru_bh_ref[0]
        h_z = jnp.dot(hb, gru_wh_ref[1], preferred_element_type=jnp.float32) + gru_bh_ref[1]
        h_n = jnp.dot(hb, gru_wh_ref[2], preferred_element_type=jnp.float32) + gru_bh_ref[2]
        r = jax.nn.sigmoid(i_r + h_r)
        z = jax.nn.sigmoid(i_z + h_z)
        n = jnp.tanh(i_n + r * h_n)
        h = (1.0 - z) * n + z * h
        x = h                        # seq-len-1 GRU output == new hidden

    h_state[...] = h                 # carry to the next decode step
    hid_out_ref[0] = h

    # log_softmax over the (padded) vocab projection; pad bias -1e30 -> exp 0.
    logits2 = (jnp.dot(h.astype(jnp.bfloat16), out_w_ref[...],
                       preferred_element_type=jnp.float32) + out_b_ref[...])
    m2 = jnp.max(logits2, axis=1, keepdims=True)
    lse = jnp.log(jnp.sum(jnp.exp(logits2 - m2), axis=1, keepdims=True)) + m2
    logp_ref[0] = logits2 - lse


def attn_decoder_forward(params, tokens, hidden, encoder_outputs,
                         *, nhid, nout, nlayers, max_length):
    """Run T fused decode steps of AttnDecoderRNN.forward.

    tokens: (T,) int32 input token per step (teacher forcing);
    hidden: (1, 1, nhid) initial hidden; encoder_outputs: (max_length, nhid).
    Returns (log_probs (T, nout), hiddens (T, nhid), attn_weights (T, max_length));
    row t of each output equals one call of the PyTorch forward at step t.
    """
    T = int(tokens.shape[0])
    H = nhid
    Lp = _round_up(max_length, 128)
    Vp = _round_up(nout, 128)
    f32, bf16 = jnp.float32, jnp.bfloat16

    emb = params["emb"].astype(f32)                              # stays in HBM
    hid0 = hidden.reshape(1, H).astype(f32)
    enc_p = jnp.zeros((Lp, H), bf16).at[:max_length, :].set(encoder_outputs.astype(bf16))
    attn_w_p = jnp.zeros((2 * H, Lp), bf16).at[:, :max_length].set(params["attn_w"].astype(bf16))
    attn_b_p = jnp.full((1, Lp), _NEG, f32).at[:, :max_length].set(params["attn_b"].astype(f32))
    comb_w = params["comb_w"].astype(bf16)
    comb_b = params["comb_b"].astype(f32)
    gru_wi = params["gru_wi"].astype(bf16)
    gru_wh = params["gru_wh"].astype(bf16)
    gru_bi = params["gru_bi"].astype(f32)
    gru_bh = params["gru_bh"].astype(f32)
    out_w_p = jnp.zeros((H, Vp), bf16).at[:, :nout].set(params["out_w"].astype(bf16))
    out_b_p = jnp.full((1, Vp), _NEG, f32).at[:, :nout].set(params["out_b"].astype(f32))

    kernel = functools.partial(_attn_decoder_kernel, H, nlayers)

    grid_spec = pltpu.PrefetchScalarGridSpec(
        num_scalar_prefetch=1,                                   # tokens -> SMEM
        grid=(T,),
        in_specs=[
            pl.BlockSpec(memory_space=pl.ANY),                   # embedding table (HBM)
            pl.BlockSpec((1, H), lambda t, tok: (0, 0)),         # initial hidden
            pl.BlockSpec((Lp, H), lambda t, tok: (0, 0)),        # encoder outputs
            pl.BlockSpec((2 * H, Lp), lambda t, tok: (0, 0)),    # attn W
            pl.BlockSpec((1, Lp), lambda t, tok: (0, 0)),        # attn b
            pl.BlockSpec((2 * H, H), lambda t, tok: (0, 0)),     # combine W
            pl.BlockSpec((1, H), lambda t, tok: (0, 0)),         # combine b
            pl.BlockSpec((3, H, H), lambda t, tok: (0, 0, 0)),   # GRU W_ih per gate
            pl.BlockSpec((3, H, H), lambda t, tok: (0, 0, 0)),   # GRU W_hh per gate
            pl.BlockSpec((3, 1, H), lambda t, tok: (0, 0, 0)),   # GRU b_ih
            pl.BlockSpec((3, 1, H), lambda t, tok: (0, 0, 0)),   # GRU b_hh
            pl.BlockSpec((H, Vp), lambda t, tok: (0, 0)),        # out W
            pl.BlockSpec((1, Vp), lambda t, tok: (0, 0)),        # out b
        ],
        out_specs=[
            pl.BlockSpec((1, 1, Vp), lambda t, tok: (t, 0, 0)),  # log-probs (padded)
            pl.BlockSpec((1, 1, H), lambda t, tok: (t, 0, 0)),   # hidden per step
            pl.BlockSpec((1, 1, Lp), lambda t, tok: (t, 0, 0)),  # attn weights (padded)
        ],
        scratch_shapes=[
            pltpu.VMEM((1, H), jnp.float32),                     # carried hidden state
            pltpu.VMEM((1, H), jnp.float32),                     # gathered embedding row
            pltpu.SemaphoreType.DMA((1,)),                       # row-gather semaphore
        ],
    )

    logp_p, hid_all, attn_p = pl.pallas_call(
        kernel,
        grid_spec=grid_spec,
        out_shape=(
            jax.ShapeDtypeStruct((T, 1, Vp), jnp.float32),
            jax.ShapeDtypeStruct((T, 1, H), jnp.float32),
            jax.ShapeDtypeStruct((T, 1, Lp), jnp.float32),
        ),
        compiler_params=pltpu.CompilerParams(
            dimension_semantics=("arbitrary",),                  # hidden carried step->step
            vmem_limit_bytes=32 * 1024 * 1024),
    )(tokens.astype(jnp.int32), emb, hid0, enc_p, attn_w_p, attn_b_p,
      comb_w, comb_b, gru_wi, gru_wh, gru_bi, gru_bh, out_w_p, out_b_p)

    return logp_p[:, 0, :nout], hid_all[:, 0, :], attn_p[:, 0, :max_length]


def init_params(key, nhid, nout, max_length):
    ks = jax.random.split(key, 11)

    def u(k, shape, fan_in):
        b = 1.0 / jnp.sqrt(jnp.float32(fan_in))
        return jax.random.uniform(k, shape, jnp.float32, -b, b)

    return {
        "emb": jax.random.normal(ks[0], (nout, nhid), jnp.float32),   # nn.Embedding(nout, nhid)
        "attn_w": u(ks[1], (2 * nhid, max_length), 2 * nhid),         # nn.Linear(2H, L), (in, out)
        "attn_b": u(ks[2], (1, max_length), 2 * nhid),
        "comb_w": u(ks[3], (2 * nhid, nhid), 2 * nhid),               # nn.Linear(2H, H)
        "comb_b": u(ks[4], (1, nhid), 2 * nhid),
        # nn.GRU(H, H): per-gate [r, z, n], stored (in, out)-transposed
        "gru_wi": u(ks[5], (3, nhid, nhid), nhid),
        "gru_wh": u(ks[6], (3, nhid, nhid), nhid),
        "gru_bi": u(ks[7], (3, 1, nhid), nhid),
        "gru_bh": u(ks[8], (3, 1, nhid), nhid),
        "out_w": u(ks[9], (nhid, nout), nhid),                        # nn.Linear(H, nout)
        "out_b": u(ks[10], (1, nout), nhid),
    }


def _bdot(a, b):
    return jnp.dot(a.astype(jnp.bfloat16), b.astype(jnp.bfloat16),
                   preferred_element_type=jnp.float32)


def reference_step(params, token, hidden2d, encoder_outputs, *, nhid, nlayers):
    """Pure-jnp single decode step mirroring the kernel's bf16-matmul numerics."""
    H = nhid
    embedded = params["emb"][token][None, :]                           # (1, H)
    logits = (_bdot(embedded, params["attn_w"][:H]) +
              _bdot(hidden2d, params["attn_w"][H:]) + params["attn_b"])
    attn_w = jax.nn.softmax(logits, axis=1)
    attn_applied = _bdot(attn_w, encoder_outputs)
    out = (_bdot(embedded, params["comb_w"][:H]) +
           _bdot(attn_applied, params["comb_w"][H:]) + params["comb_b"])
    out = jnp.maximum(out, 0.0)
    x, h = out, hidden2d
    for _ in range(nlayers):
        i_r = _bdot(x, params["gru_wi"][0]) + params["gru_bi"][0]
        i_z = _bdot(x, params["gru_wi"][1]) + params["gru_bi"][1]
        i_n = _bdot(x, params["gru_wi"][2]) + params["gru_bi"][2]
        h_r = _bdot(h, params["gru_wh"][0]) + params["gru_bh"][0]
        h_z = _bdot(h, params["gru_wh"][1]) + params["gru_bh"][1]
        h_n = _bdot(h, params["gru_wh"][2]) + params["gru_bh"][2]
        r = jax.nn.sigmoid(i_r + h_r)
        z = jax.nn.sigmoid(i_z + h_z)
        n = jnp.tanh(i_n + r * h_n)
        h = (1.0 - z) * n + z * h
        x = h
    logp = jax.nn.log_softmax(_bdot(h, params["out_w"]) + params["out_b"], axis=1)
    return logp, h, attn_w


if __name__ == "__main__":
    nhid, nout, nlayers, max_length = 32, 16, 2, MAX_LENGTH
    T = 6                                                   # fused decode steps

    key = jax.random.PRNGKey(0)
    kp, kh, ke, kt = jax.random.split(key, 4)

    params = init_params(kp, nhid, nout, max_length)
    tokens = jax.random.randint(kt, (T,), 0, nout, dtype=jnp.int32)
    hidden0 = jax.random.normal(kh, (1, 1, nhid), jnp.float32)
    encoder_outputs = jax.random.normal(ke, (max_length, nhid), jnp.float32)

    logp, hiddens, attn_w = attn_decoder_forward(
        params, tokens, hidden0, encoder_outputs,
        nhid=nhid, nout=nout, nlayers=nlayers, max_length=max_length)
    jax.block_until_ready((logp, hiddens, attn_w))

    assert logp.shape == (T, nout)
    assert hiddens.shape == (T, nhid)
    assert attn_w.shape == (T, max_length)

    # step-by-step pure-jnp reference (hidden carried across steps)
    h = hidden0.reshape(1, nhid)
    ref_logp, ref_hid, ref_attn = [], [], []
    for t in range(T):
        lp, h, aw = reference_step(params, tokens[t], h, encoder_outputs,
                                   nhid=nhid, nlayers=nlayers)
        ref_logp.append(lp)
        ref_hid.append(h)
        ref_attn.append(aw)
    ref_logp = jnp.concatenate(ref_logp, axis=0)
    ref_hid = jnp.concatenate(ref_hid, axis=0)
    ref_attn = jnp.concatenate(ref_attn, axis=0)

    # bf16 matmuls + approx-reciprocal softmax -> relaxed tolerances
    assert bool(jnp.allclose(attn_w, ref_attn, atol=5e-2, rtol=2e-2)), "attn weights mismatch"
    assert bool(jnp.allclose(hiddens, ref_hid, atol=5e-2, rtol=2e-2)), "hidden mismatch"
    assert bool(jnp.allclose(logp, ref_logp, atol=5e-2, rtol=2e-2)), "log-probs mismatch"

    print("KERNEL_OK")
</pallas_src>

<mosaic_0001>
module attributes {stable_mosaic.version = 11 : i64} {
  func.func @_attn_decoder_kernel(%arg0: i32, %arg1: memref<6xi32, #tpu.memory_space<smem>>, %arg2: memref<16x32xf32, #tpu.memory_space<any>>, %arg3: memref<1x32xf32, #tpu.memory_space<vmem>>, %arg4: memref<128x32xbf16, #tpu.memory_space<vmem>>, %arg5: memref<64x128xbf16, #tpu.memory_space<vmem>>, %arg6: memref<1x128xf32, #tpu.memory_space<vmem>>, %arg7: memref<64x32xbf16, #tpu.memory_space<vmem>>, %arg8: memref<1x32xf32, #tpu.memory_space<vmem>>, %arg9: memref<3x32x32xbf16, #tpu.memory_space<vmem>>, %arg10: memref<3x32x32xbf16, #tpu.memory_space<vmem>>, %arg11: memref<3x1x32xf32, #tpu.memory_space<vmem>>, %arg12: memref<3x1x32xf32, #tpu.memory_space<vmem>>, %arg13: memref<32x128xbf16, #tpu.memory_space<vmem>>, %arg14: memref<1x128xf32, #tpu.memory_space<vmem>>, %arg15: memref<1x1x128xf32, #tpu.memory_space<vmem>>, %arg16: memref<1x1x32xf32, #tpu.memory_space<vmem>>, %arg17: memref<1x1x128xf32, #tpu.memory_space<vmem>>, %arg18: memref<1x32xf32, #tpu.memory_space<vmem>>, %arg19: memref<1x32xf32, #tpu.memory_space<vmem>>, %arg20: memref<1x!tpu.dma_semaphore, #tpu.memory_space<semaphore_mem>>) attributes {dimension_semantics = [#tpu.dimension_semantics<arbitrary>], iteration_bounds = array<i64: 6>, scalar_prefetch = 1 : i64, scratch_operands = 3 : i64, tpu.core_type = #tpu.core_type<tc>, window_params = [{}, {pipeline_mode = #tpu.pipeline_mode<synchronous>, transform_indices = @transform_1, window_bounds = array<i64: 1, 32>}, {pipeline_mode = #tpu.pipeline_mode<synchronous>, transform_indices = @transform_2, window_bounds = array<i64: 128, 32>}, {pipeline_mode = #tpu.pipeline_mode<synchronous>, transform_indices = @transform_3, window_bounds = array<i64: 64, 128>}, {pipeline_mode = #tpu.pipeline_mode<synchronous>, transform_indices = @transform_4, window_bounds = array<i64: 1, 128>}, {pipeline_mode = #tpu.pipeline_mode<synchronous>, transform_indices = @transform_5, window_bounds = array<i64: 64, 32>}, {pipeline_mode = #tpu.pipeline_mode<synchronous>, transform_indices = @transform_6, window_bounds = array<i64: 1, 32>}, {pipeline_mode = #tpu.pipeline_mode<synchronous>, transform_indices = @transform_7, window_bounds = array<i64: 3, 32, 32>}, {pipeline_mode = #tpu.pipeline_mode<synchronous>, transform_indices = @transform_8, window_bounds = array<i64: 3, 32, 32>}, {pipeline_mode = #tpu.pipeline_mode<synchronous>, transform_indices = @transform_9, window_bounds = array<i64: 3, 1, 32>}, {pipeline_mode = #tpu.pipeline_mode<synchronous>, transform_indices = @transform_10, window_bounds = array<i64: 3, 1, 32>}, {pipeline_mode = #tpu.pipeline_mode<synchronous>, transform_indices = @transform_11, window_bounds = array<i64: 32, 128>}, {pipeline_mode = #tpu.pipeline_mode<synchronous>, transform_indices = @transform_12, window_bounds = array<i64: 1, 128>}, {transform_indices = @transform_13, window_bounds = array<i64: 1, 1, 128>}, {transform_indices = @transform_14, window_bounds = array<i64: 1, 1, 32>}, {transform_indices = @transform_15, window_bounds = array<i64: 1, 1, 128>}]} {
    %0 = arith.index_cast %arg0 : i32 to index
    %1 = memref.load %arg1[%0] : memref<6xi32, #tpu.memory_space<smem>>
    %c0_i32 = arith.constant 0 : i32
    %c0_i32_0 = arith.constant 0 : i32
    %2 = tpu.memref_slice %arg2[%1, %c0_i32_0] : memref<16x32xf32, #tpu.memory_space<any>> -> memref<1x32xf32, #tpu.memory_space<any>>
    %3 = tpu.memref_slice %arg20[%c0_i32] : memref<1x!tpu.dma_semaphore, #tpu.memory_space<semaphore_mem>> -> memref<1x!tpu.dma_semaphore, #tpu.memory_space<semaphore_mem>>
    %4 = tpu.memref_squeeze %3 : memref<1x!tpu.dma_semaphore, #tpu.memory_space<semaphore_mem>> -> memref<!tpu.dma_semaphore, #tpu.memory_space<semaphore_mem>>
    tpu.enqueue_dma source(%2 : memref<1x32xf32, #tpu.memory_space<any>>) target(%arg19 : memref<1x32xf32, #tpu.memory_space<vmem>>) target_semaphore(%4 : memref<!tpu.dma_semaphore, #tpu.memory_space<semaphore_mem>>)
    %c0_i32_1 = arith.constant 0 : i32
    %5 = arith.cmpi eq, %arg0, %c0_i32_1 : i32
    %6 = arith.extui %5 : i1 to i32
    %c0_i32_2 = arith.constant 0 : i32
    %7 = arith.cmpi ne, %6, %c0_i32_2 : i32
    scf.if %7 {
      %c0_134 = arith.constant 0 : index
      %c0_135 = arith.constant 0 : index
      %187 = vector.load %arg3[%c0_134, %c0_135] : memref<1x32xf32, #tpu.memory_space<vmem>>, vector<1x32xf32>
      %c0_136 = arith.constant 0 : index
      %c0_137 = arith.constant 0 : index
      %188 = vector.load %arg18[%c0_136, %c0_137] : memref<1x32xf32, #tpu.memory_space<vmem>>, vector<1x32xf32>
      tpu.vector_store %arg18[%c0_136, %c0_137], %187 {strides = array<i32>} : memref<1x32xf32, #tpu.memory_space<vmem>>, vector<1x32xf32>,
    } else {
    }
    %c0 = arith.constant 0 : index
    %c0_3 = arith.constant 0 : index
    %8 = vector.load %arg18[%c0, %c0_3] : memref<1x32xf32, #tpu.memory_space<vmem>>, vector<1x32xf32>
    %9 = arith.truncf %8 : vector<1x32xf32> to vector<1x32xbf16>
    %c32 = arith.constant 32 : index
    %c0_4 = arith.constant 0 : index
    %10 = vector.load %arg5[%c32, %c0_4] : memref<64x128xbf16, #tpu.memory_space<vmem>>, vector<32x128xbf16>
    %cst = arith.constant dense<0.000000e+00> : vector<1x128xf32>
    %11 = tpu.matmul %9, %10, %cst {dimension_numbers = #tpu.dot_dimension_numbers<[1], [0], [0], [1], [0, 0, 1, 1], [], []>} : vector<1x32xbf16>, vector<32x128xbf16>, vector<1x128xf32> -> vector<1x128xf32>
    %c0_i32_5 = arith.constant 0 : i32
    %c0_i32_6 = arith.constant 0 : i32
    %12 = tpu.memref_slice %arg2[%1, %c0_i32_6] : memref<16x32xf32, #tpu.memory_space<any>> -> memref<1x32xf32, #tpu.memory_space<any>>
    %13 = tpu.memref_slice %arg20[%c0_i32_5] : memref<1x!tpu.dma_semaphore, #tpu.memory_space<semaphore_mem>> -> memref<1x!tpu.dma_semaphore, #tpu.memory_space<semaphore_mem>>
    %14 = tpu.memref_squeeze %13 : memref<1x!tpu.dma_semaphore, #tpu.memory_space<semaphore_mem>> -> memref<!tpu.dma_semaphore, #tpu.memory_space<semaphore_mem>>
    tpu.wait_dma2 semaphore(%14 : memref<!tpu.dma_semaphore, #tpu.memory_space<semaphore_mem>>) src(%12 : memref<1x32xf32, #tpu.memory_space<any>>) dst(%arg19 : memref<1x32xf32, #tpu.memory_space<vmem>>)
    %c0_7 = arith.constant 0 : index
    %c0_8 = arith.constant 0 : index
    %15 = vector.load %arg19[%c0_7, %c0_8] : memref<1x32xf32, #tpu.memory_space<vmem>>, vector<1x32xf32>
    %16 = arith.truncf %15 : vector<1x32xf32> to vector<1x32xbf16>
    %c0_9 = arith.constant 0 : index
    %c0_10 = arith.constant 0 : index
    %17 = vector.load %arg5[%c0_9, %c0_10] : memref<64x128xbf16, #tpu.memory_space<vmem>>, vector<32x128xbf16>
    %cst_11 = arith.constant dense<0.000000e+00> : vector<1x128xf32>
    %18 = tpu.matmul %16, %17, %cst_11 {dimension_numbers = #tpu.dot_dimension_numbers<[1], [0], [0], [1], [0, 0, 1, 1], [], []>} : vector<1x32xbf16>, vector<32x128xbf16>, vector<1x128xf32> -> vector<1x128xf32>
    %19 = arith.addf %18, %11 : vector<1x128xf32>
    %c0_12 = arith.constant 0 : index
    %c0_13 = arith.constant 0 : index
    %20 = vector.load %arg6[%c0_12, %c0_13] : memref<1x128xf32, #tpu.memory_space<vmem>>, vector<1x128xf32>
    %21 = arith.addf %19, %20 : vector<1x128xf32>
    %cst_14 = arith.constant dense<0xFF800000> : vector<1xf32>
    %22 = vector.multi_reduction <maximumf>, %21, %cst_14 [1] : vector<1x128xf32> to vector<1xf32>
    %23 = vector.shape_cast %22 : vector<1xf32> to vector<1x1xf32>
    %24 = vector.broadcast %23 : vector<1x1xf32> to vector<1x128xf32>
    %25 = arith.subf %21, %24 : vector<1x128xf32>
    %26 = math.exp %25 : vector<1x128xf32>
    %cst_15 = arith.constant dense<0.000000e+00> : vector<1xf32>
    %27 = vector.multi_reduction <add>, %26, %cst_15 [1] : vector<1x128xf32> to vector<1xf32>
    %28 = vector.shape_cast %27 : vector<1xf32> to vector<1x1xf32>
    %29 = tpu.reciprocal %28 {approx = true} : vector<1x1xf32> -> vector<1x1xf32>
    %30 = vector.broadcast %29 : vector<1x1xf32> to vector<1x128xf32>
    %31 = arith.mulf %26, %30 : vector<1x128xf32>
    %c0_16 = arith.constant 0 : index
    %c0_17 = arith.constant 0 : index
    %c0_18 = arith.constant 0 : index
    %32 = vector.load %arg17[%c0_16, %c0_17, %c0_18] : memref<1x1x128xf32, #tpu.memory_space<vmem>>, vector<1x1x128xf32>
    %33 = vector.shape_cast %32 : vector<1x1x128xf32> to vector<1x128xf32>
    %34 = vector.shape_cast %31 : vector<1x128xf32> to vector<1x1x128xf32>
    tpu.vector_store %arg17[%c0_16, %c0_17, %c0_18], %34 {strides = array<i32>} : memref<1x1x128xf32, #tpu.memory_space<vmem>>, vector<1x1x128xf32>,
    %35 = arith.truncf %31 : vector<1x128xf32> to vector<1x128xbf16>
    %c0_19 = arith.constant 0 : index
    %c0_20 = arith.constant 0 : index
    %36 = vector.load %arg4[%c0_19, %c0_20] : memref<128x32xbf16, #tpu.memory_space<vmem>>, vector<128x32xbf16>
    %cst_21 = arith.constant dense<0.000000e+00> : vector<1x32xf32>
    %37 = tpu.matmul %35, %36, %cst_21 {dimension_numbers = #tpu.dot_dimension_numbers<[1], [0], [0], [1], [0, 0, 1, 1], [], []>} : vector<1x128xbf16>, vector<128x32xbf16>, vector<1x32xf32> -> vector<1x32xf32>
    %c0_22 = arith.constant 0 : index
    %c0_23 = arith.constant 0 : index
    %38 = vector.load %arg7[%c0_22, %c0_23] : memref<64x32xbf16, #tpu.memory_space<vmem>>, vector<32x32xbf16>
    %cst_24 = arith.constant dense<0.000000e+00> : vector<1x32xf32>
    %39 = tpu.matmul %16, %38, %cst_24 {dimension_numbers = #tpu.dot_dimension_numbers<[1], [0], [0], [1], [0, 0, 1, 1], [], []>} : vector<1x32xbf16>, vector<32x32xbf16>, vector<1x32xf32> -> vector<1x32xf32>
    %40 = arith.truncf %37 : vector<1x32xf32> to vector<1x32xbf16>
    %c32_25 = arith.constant 32 : index
    %c0_26 = arith.constant 0 : index
    %41 = vector.load %arg7[%c32_25, %c0_26] : memref<64x32xbf16, #tpu.memory_space<vmem>>, vector<32x32xbf16>
    %cst_27 = arith.constant dense<0.000000e+00> : vector<1x32xf32>
    %42 = tpu.matmul %40, %41, %cst_27 {dimension_numbers = #tpu.dot_dimension_numbers<[1], [0], [0], [1], [0, 0, 1, 1], [], []>} : vector<1x32xbf16>, vector<32x32xbf16>, vector<1x32xf32> -> vector<1x32xf32>
    %43 = arith.addf %39, %42 : vector<1x32xf32>
    %c0_28 = arith.constant 0 : index
    %c0_29 = arith.constant 0 : index
    %44 = vector.load %arg8[%c0_28, %c0_29] : memref<1x32xf32, #tpu.memory_space<vmem>>, vector<1x32xf32>
    %45 = arith.addf %43, %44 : vector<1x32xf32>
    %cst_30 = arith.constant 0.000000e+00 : f32
    %46 = vector.broadcast %cst_30 : f32 to vector<1x32xf32>
    %47 = arith.maximumf %45, %46 : vector<1x32xf32>
    %48 = arith.truncf %47 : vector<1x32xf32> to vector<1x32xbf16>
    %49 = arith.truncf %8 : vector<1x32xf32> to vector<1x32xbf16>
    %c0_31 = arith.constant 0 : index
    %c0_32 = arith.constant 0 : index
    %c0_33 = arith.constant 0 : index
    %50 = vector.load %arg9[%c0_31, %c0_32, %c0_33] : memref<3x32x32xbf16, #tpu.memory_space<vmem>>, vector<1x32x32xbf16>
    %51 = vector.shape_cast %50 : vector<1x32x32xbf16> to vector<32x32xbf16>
    %cst_34 = arith.constant dense<0.000000e+00> : vector<1x32xf32>
    %52 = tpu.matmul %48, %51, %cst_34 {dimension_numbers = #tpu.dot_dimension_numbers<[1], [0], [0], [1], [0, 0, 1, 1], [], []>} : vector<1x32xbf16>, vector<32x32xbf16>, vector<1x32xf32> -> vector<1x32xf32>
    %c0_35 = arith.constant 0 : index
    %c0_36 = arith.constant 0 : index
    %c0_37 = arith.constant 0 : index
    %53 = vector.load %arg11[%c0_35, %c0_36, %c0_37] : memref<3x1x32xf32, #tpu.memory_space<vmem>>, vector<1x1x32xf32>
    %54 = vector.shape_cast %53 : vector<1x1x32xf32> to vector<1x32xf32>
    %55 = arith.addf %52, %54 : vector<1x32xf32>
    %c1 = arith.constant 1 : index
    %c0_38 = arith.constant 0 : index
    %c0_39 = arith.constant 0 : index
    %56 = vector.load %arg9[%c1, %c0_38, %c0_39] : memref<3x32x32xbf16, #tpu.memory_space<vmem>>, vector<1x32x32xbf16>
    %57 = vector.shape_cast %56 : vector<1x32x32xbf16> to vector<32x32xbf16>
    %cst_40 = arith.constant dense<0.000000e+00> : vector<1x32xf32>
    %58 = tpu.matmul %48, %57, %cst_40 {dimension_numbers = #tpu.dot_dimension_numbers<[1], [0], [0], [1], [0, 0, 1, 1], [], []>} : vector<1x32xbf16>, vector<32x32xbf16>, vector<1x32xf32> -> vector<1x32xf32>
    %c1_41 = arith.constant 1 : index
    %c0_42 = arith.constant 0 : index
    %c0_43 = arith.constant 0 : index
    %59 = vector.load %arg11[%c1_41, %c0_42, %c0_43] : memref<3x1x32xf32, #tpu.memory_space<vmem>>, vector<1x1x32xf32>
    %60 = vector.shape_cast %59 : vector<1x1x32xf32> to vector<1x32xf32>
    %61 = arith.addf %58, %60 : vector<1x32xf32>
    %c2 = arith.constant 2 : index
    %c0_44 = arith.constant 0 : index
    %c0_45 = arith.constant 0 : index
    %62 = vector.load %arg9[%c2, %c0_44, %c0_45] : memref<3x32x32xbf16, #tpu.memory_space<vmem>>, vector<1x32x32xbf16>
    %63 = vector.shape_cast %62 : vector<1x32x32xbf16> to vector<32x32xbf16>
    %cst_46 = arith.constant dense<0.000000e+00> : vector<1x32xf32>
    %64 = tpu.matmul %48, %63, %cst_46 {dimension_numbers = #tpu.dot_dimension_numbers<[1], [0], [0], [1], [0, 0, 1, 1], [], []>} : vector<1x32xbf16>, vector<32x32xbf16>, vector<1x32xf32> -> vector<1x32xf32>
    %c2_47 = arith.constant 2 : index
    %c0_48 = arith.constant 0 : index
    %c0_49 = arith.constant 0 : index
    %65 = vector.load %arg11[%c2_47, %c0_48, %c0_49] : memref<3x1x32xf32, #tpu.memory_space<vmem>>, vector<1x1x32xf32>
    %66 = vector.shape_cast %65 : vector<1x1x32xf32> to vector<1x32xf32>
    %67 = arith.addf %64, %66 : vector<1x32xf32>
    %c0_50 = arith.constant 0 : index
    %c0_51 = arith.constant 0 : index
    %c0_52 = arith.constant 0 : index
    %68 = vector.load %arg10[%c0_50, %c0_51, %c0_52] : memref<3x32x32xbf16, #tpu.memory_space<vmem>>, vector<1x32x32xbf16>
    %69 = vector.shape_cast %68 : vector<1x32x32xbf16> to vector<32x32xbf16>
    %cst_53 = arith.constant dense<0.000000e+00> : vector<1x32xf32>
    %70 = tpu.matmul %49, %69, %cst_53 {dimension_numbers = #tpu.dot_dimension_numbers<[1], [0], [0], [1], [0, 0, 1, 1], [], []>} : vector<1x32xbf16>, vector<32x32xbf16>, vector<1x32xf32> -> vector<1x32xf32>
    %c0_54 = arith.constant 0 : index
    %c0_55 = arith.constant 0 : index
    %c0_56 = arith.constant 0 : index
    %71 = vector.load %arg12[%c0_54, %c0_55, %c0_56] : memref<3x1x32xf32, #tpu.memory_space<vmem>>, vector<1x1x32xf32>
    %72 = vector.shape_cast %71 : vector<1x1x32xf32> to vector<1x32xf32>
    %73 = arith.addf %70, %72 : vector<1x32xf32>
    %c1_57 = arith.constant 1 : index
    %c0_58 = arith.constant 0 : index
    %c0_59 = arith.constant 0 : index
    %74 = vector.load %arg10[%c1_57, %c0_58, %c0_59] : memref<3x32x32xbf16, #tpu.memory_space<vmem>>, vector<1x32x32xbf16>
    %75 = vector.shape_cast %74 : vector<1x32x32xbf16> to vector<32x32xbf16>
    %cst_60 = arith.constant dense<0.000000e+00> : vector<1x32xf32>
    %76 = tpu.matmul %49, %75, %cst_60 {dimension_numbers = #tpu.dot_dimension_numbers<[1], [0], [0], [1], [0, 0, 1, 1], [], []>} : vector<1x32xbf16>, vector<32x32xbf16>, vector<1x32xf32> -> vector<1x32xf32>
    %c1_61 = arith.constant 1 : index
    %c0_62 = arith.constant 0 : index
    %c0_63 = arith.constant 0 : index
    %77 = vector.load %arg12[%c1_61, %c0_62, %c0_63] : memref<3x1x32xf32, #tpu.memory_space<vmem>>, vector<1x1x32xf32>
    %78 = vector.shape_cast %77 : vector<1x1x32xf32> to vector<1x32xf32>
    %79 = arith.addf %76, %78 : vector<1x32xf32>
    %c2_64 = arith.constant 2 : index
    %c0_65 = arith.constant 0 : index
    %c0_66 = arith.constant 0 : index
    %80 = vector.load %arg10[%c2_64, %c0_65, %c0_66] : memref<3x32x32xbf16, #tpu.memory_space<vmem>>, vector<1x32x32xbf16>
    %81 = vector.shape_cast %80 : vector<1x32x32xbf16> to vector<32x32xbf16>
    %cst_67 = arith.constant dense<0.000000e+00> : vector<1x32xf32>
    %82 = tpu.matmul %49, %81, %cst_67 {dimension_numbers = #tpu.dot_dimension_numbers<[1], [0], [0], [1], [0, 0, 1, 1], [], []>} : vector<1x32xbf16>, vector<32x32xbf16>, vector<1x32xf32> -> vector<1x32xf32>
    %c2_68 = arith.constant 2 : index
    %c0_69 = arith.constant 0 : index
    %c0_70 = arith.constant 0 : index
    %83 = vector.load %arg12[%c2_68, %c0_69, %c0_70] : memref<3x1x32xf32, #tpu.memory_space<vmem>>, vector<1x1x32xf32>
    %84 = vector.shape_cast %83 : vector<1x1x32xf32> to vector<1x32xf32>
    %85 = arith.addf %82, %84 : vector<1x32xf32>
    %86 = arith.addf %55, %73 : vector<1x32xf32>
    %87 = arith.negf %86 : vector<1x32xf32>
    %88 = math.exp %87 : vector<1x32xf32>
    %cst_71 = arith.constant 1.000000e+00 : f32
    %89 = vector.broadcast %cst_71 : f32 to vector<1x32xf32>
    %90 = arith.addf %89, %88 : vector<1x32xf32>
    %91 = arith.divf %89, %90 : vector<1x32xf32>
    %92 = arith.addf %61, %79 : vector<1x32xf32>
    %93 = arith.negf %92 : vector<1x32xf32>
    %94 = math.exp %93 : vector<1x32xf32>
    %cst_72 = arith.constant 1.000000e+00 : f32
    %95 = vector.broadcast %cst_72 : f32 to vector<1x32xf32>
    %96 = arith.addf %95, %94 : vector<1x32xf32>
    %97 = arith.divf %95, %96 : vector<1x32xf32>
    %98 = arith.mulf %91, %85 : vector<1x32xf32>
    %99 = arith.addf %67, %98 : vector<1x32xf32>
    %100 = math.tanh %99 : vector<1x32xf32>
    %cst_73 = arith.constant 1.000000e+00 : f32
    %101 = vector.broadcast %cst_73 : f32 to vector<1x32xf32>
    %102 = arith.subf %101, %97 : vector<1x32xf32>
    %103 = arith.mulf %102, %100 : vector<1x32xf32>
    %104 = arith.mulf %97, %8 : vector<1x32xf32>
    %105 = arith.addf %103, %104 : vector<1x32xf32>
    %106 = arith.truncf %105 : vector<1x32xf32> to vector<1x32xbf16>
    %107 = arith.truncf %105 : vector<1x32xf32> to vector<1x32xbf16>
    %c0_74 = arith.constant 0 : index
    %c0_75 = arith.constant 0 : index
    %c0_76 = arith.constant 0 : index
    %108 = vector.load %arg9[%c0_74, %c0_75, %c0_76] : memref<3x32x32xbf16, #tpu.memory_space<vmem>>, vector<1x32x32xbf16>
    %109 = vector.shape_cast %108 : vector<1x32x32xbf16> to vector<32x32xbf16>
    %cst_77 = arith.constant dense<0.000000e+00> : vector<1x32xf32>
    %110 = tpu.matmul %106, %109, %cst_77 {dimension_numbers = #tpu.dot_dimension_numbers<[1], [0], [0], [1], [0, 0, 1, 1], [], []>} : vector<1x32xbf16>, vector<32x32xbf16>, vector<1x32xf32> -> vector<1x32xf32>
    %c0_78 = arith.constant 0 : index
    %c0_79 = arith.constant 0 : index
    %c0_80 = arith.constant 0 : index
    %111 = vector.load %arg11[%c0_78, %c0_79, %c0_80] : memref<3x1x32xf32, #tpu.memory_space<vmem>>, vector<1x1x32xf32>
    %112 = vector.shape_cast %111 : vector<1x1x32xf32> to vector<1x32xf32>
    %113 = arith.addf %110, %112 : vector<1x32xf32>
    %c1_81 = arith.constant 1 : index
    %c0_82 = arith.constant 0 : index
    %c0_83 = arith.constant 0 : index
    %114 = vector.load %arg9[%c1_81, %c0_82, %c0_83] : memref<3x32x32xbf16, #tpu.memory_space<vmem>>, vector<1x32x32xbf16>
    %115 = vector.shape_cast %114 : vector<1x32x32xbf16> to vector<32x32xbf16>
    %cst_84 = arith.constant dense<0.000000e+00> : vector<1x32xf32>
    %116 = tpu.matmul %106, %115, %cst_84 {dimension_numbers = #tpu.dot_dimension_numbers<[1], [0], [0], [1], [0, 0, 1, 1], [], []>} : vector<1x32xbf16>, vector<32x32xbf16>, vector<1x32xf32> -> vector<1x32xf32>
    %c1_85 = arith.constant 1 : index
    %c0_86 = arith.constant 0 : index
    %c0_87 = arith.constant 0 : index
    %117 = vector.load %arg11[%c1_85, %c0_86, %c0_87] : memref<3x1x32xf32, #tpu.memory_space<vmem>>, vector<1x1x32xf32>
    %118 = vector.shape_cast %117 : vector<1x1x32xf32> to vector<1x32xf32>
    %119 = arith.addf %116, %118 : vector<1x32xf32>
    %c2_88 = arith.constant 2 : index
    %c0_89 = arith.constant 0 : index
    %c0_90 = arith.constant 0 : index
    %120 = vector.load %arg9[%c2_88, %c0_89, %c0_90] : memref<3x32x32xbf16, #tpu.memory_space<vmem>>, vector<1x32x32xbf16>
    %121 = vector.shape_cast %120 : vector<1x32x32xbf16> to vector<32x32xbf16>
    %cst_91 = arith.constant dense<0.000000e+00> : vector<1x32xf32>
    %122 = tpu.matmul %106, %121, %cst_91 {dimension_numbers = #tpu.dot_dimension_numbers<[1], [0], [0], [1], [0, 0, 1, 1], [], []>} : vector<1x32xbf16>, vector<32x32xbf16>, vector<1x32xf32> -> vector<1x32xf32>
    %c2_92 = arith.constant 2 : index
    %c0_93 = arith.constant 0 : index
    %c0_94 = arith.constant 0 : index
    %123 = vector.load %arg11[%c2_92, %c0_93, %c0_94] : memref<3x1x32xf32, #tpu.memory_space<vmem>>, vector<1x1x32xf32>
    %124 = vector.shape_cast %123 : vector<1x1x32xf32> to vector<1x32xf32>
    %125 = arith.addf %122, %124 : vector<1x32xf32>
    %c0_95 = arith.constant 0 : index
    %c0_96 = arith.constant 0 : index
    %c0_97 = arith.constant 0 : index
    %126 = vector.load %arg10[%c0_95, %c0_96, %c0_97] : memref<3x32x32xbf16, #tpu.memory_space<vmem>>, vector<1x32x32xbf16>
    %127 = vector.shape_cast %126 : vector<1x32x32xbf16> to vector<32x32xbf16>
    %cst_98 = arith.constant dense<0.000000e+00> : vector<1x32xf32>
    %128 = tpu.matmul %107, %127, %cst_98 {dimension_numbers = #tpu.dot_dimension_numbers<[1], [0], [0], [1], [0, 0, 1, 1], [], []>} : vector<1x32xbf16>, vector<32x32xbf16>, vector<1x32xf32> -> vector<1x32xf32>
    %c0_99 = arith.constant 0 : index
    %c0_100 = arith.constant 0 : index
    %c0_101 = arith.constant 0 : index
    %129 = vector.load %arg12[%c0_99, %c0_100, %c0_101] : memref<3x1x32xf32, #tpu.memory_space<vmem>>, vector<1x1x32xf32>
    %130 = vector.shape_cast %129 : vector<1x1x32xf32> to vector<1x32xf32>
    %131 = arith.addf %128, %130 : vector<1x32xf32>
    %c1_102 = arith.constant 1 : index
    %c0_103 = arith.constant 0 : index
    %c0_104 = arith.constant 0 : index
    %132 = vector.load %arg10[%c1_102, %c0_103, %c0_104] : memref<3x32x32xbf16, #tpu.memory_space<vmem>>, vector<1x32x32xbf16>
    %133 = vector.shape_cast %132 : vector<1x32x32xbf16> to vector<32x32xbf16>
    %cst_105 = arith.constant dense<0.000000e+00> : vector<1x32xf32>
    %134 = tpu.matmul %107, %133, %cst_105 {dimension_numbers = #tpu.dot_dimension_numbers<[1], [0], [0], [1], [0, 0, 1, 1], [], []>} : vector<1x32xbf16>, vector<32x32xbf16>, vector<1x32xf32> -> vector<1x32xf32>
    %c1_106 = arith.constant 1 : index
    %c0_107 = arith.constant 0 : index
    %c0_108 = arith.constant 0 : index
    %135 = vector.load %arg12[%c1_106, %c0_107, %c0_108] : memref<3x1x32xf32, #tpu.memory_space<vmem>>, vector<1x1x32xf32>
    %136 = vector.shape_cast %135 : vector<1x1x32xf32> to vector<1x32xf32>
    %137 = arith.addf %134, %136 : vector<1x32xf32>
    %c2_109 = arith.constant 2 : index
    %c0_110 = arith.constant 0 : index
    %c0_111 = arith.constant 0 : index
    %138 = vector.load %arg10[%c2_109, %c0_110, %c0_111] : memref<3x32x32xbf16, #tpu.memory_space<vmem>>, vector<1x32x32xbf16>
    %139 = vector.shape_cast %138 : vector<1x32x32xbf16> to vector<32x32xbf16>
    %cst_112 = arith.constant dense<0.000000e+00> : vector<1x32xf32>
    %140 = tpu.matmul %107, %139, %cst_112 {dimension_numbers = #tpu.dot_dimension_numbers<[1], [0], [0], [1], [0, 0, 1, 1], [], []>} : vector<1x32xbf16>, vector<32x32xbf16>, vector<1x32xf32> -> vector<1x32xf32>
    %c2_113 = arith.constant 2 : index
    %c0_114 = arith.constant 0 : index
    %c0_115 = arith.constant 0 : index
    %141 = vector.load %arg12[%c2_113, %c0_114, %c0_115] : memref<3x1x32xf32, #tpu.memory_space<vmem>>, vector<1x1x32xf32>
    %142 = vector.shape_cast %141 : vector<1x1x32xf32> to vector<1x32xf32>
    %143 = arith.addf %140, %142 : vector<1x32xf32>
    %144 = arith.addf %113, %131 : vector<1x32xf32>
    %145 = arith.negf %144 : vector<1x32xf32>
    %146 = math.exp %145 : vector<1x32xf32>
    %cst_116 = arith.constant 1.000000e+00 : f32
    %147 = vector.broadcast %cst_116 : f32 to vector<1x32xf32>
    %148 = arith.addf %147, %146 : vector<1x32xf32>
    %149 = arith.divf %147, %148 : vector<1x32xf32>
    %150 = arith.addf %119, %137 : vector<1x32xf32>
    %151 = arith.negf %150 : vector<1x32xf32>
    %152 = math.exp %151 : vector<1x32xf32>
    %cst_117 = arith.constant 1.000000e+00 : f32
    %153 = vector.broadcast %cst_117 : f32 to vector<1x32xf32>
    %154 = arith.addf %153, %152 : vector<1x32xf32>
    %155 = arith.divf %153, %154 : vector<1x32xf32>
    %156 = arith.mulf %149, %143 : vector<1x32xf32>
    %157 = arith.addf %125, %156 : vector<1x32xf32>
    %158 = math.tanh %157 : vector<1x32xf32>
    %cst_118 = arith.constant 1.000000e+00 : f32
    %159 = vector.broadcast %cst_118 : f32 to vector<1x32xf32>
    %160 = arith.subf %159, %155 : vector<1x32xf32>
    %161 = arith.mulf %160, %158 : vector<1x32xf32>
    %162 = arith.mulf %155, %105 : vector<1x32xf32>
    %163 = arith.addf %161, %162 : vector<1x32xf32>
    %c0_119 = arith.constant 0 : index
    %c0_120 = arith.constant 0 : index
    %164 = vector.load %arg18[%c0_119, %c0_120] : memref<1x32xf32, #tpu.memory_space<vmem>>, vector<1x32xf32>
    tpu.vector_store %arg18[%c0_119, %c0_120], %163 {strides = array<i32>} : memref<1x32xf32, #tpu.memory_space<vmem>>, vector<1x32xf32>,
    %c0_121 = arith.constant 0 : index
    %c0_122 = arith.constant 0 : index
    %c0_123 = arith.constant 0 : index
    %165 = vector.load %arg16[%c0_121, %c0_122, %c0_123] : memref<1x1x32xf32, #tpu.memory_space<vmem>>, vector<1x1x32xf32>
    %166 = vector.shape_cast %165 : vector<1x1x32xf32> to vector<1x32xf32>
    %167 = vector.shape_cast %163 : vector<1x32xf32> to vector<1x1x32xf32>
    tpu.vector_store %arg16[%c0_121, %c0_122, %c0_123], %167 {strides = array<i32>} : memref<1x1x32xf32, #tpu.memory_space<vmem>>, vector<1x1x32xf32>,
    %168 = arith.truncf %163 : vector<1x32xf32> to vector<1x32xbf16>
    %c0_124 = arith.constant 0 : index
    %c0_125 = arith.constant 0 : index
    %169 = vector.load %arg13[%c0_124, %c0_125] : memref<32x128xbf16, #tpu.memory_space<vmem>>, vector<32x128xbf16>
    %cst_126 = arith.constant dense<0.000000e+00> : vector<1x128xf32>
    %170 = tpu.matmul %168, %169, %cst_126 {dimension_numbers = #tpu.dot_dimension_numbers<[1], [0], [0], [1], [0, 0, 1, 1], [], []>} : vector<1x32xbf16>, vector<32x128xbf16>, vector<1x128xf32> -> vector<1x128xf32>
    %c0_127 = arith.constant 0 : index
    %c0_128 = arith.constant 0 : index
    %171 = vector.load %arg14[%c0_127, %c0_128] : memref<1x128xf32, #tpu.memory_space<vmem>>, vector<1x128xf32>
    %172 = arith.addf %170, %171 : vector<1x128xf32>
    %cst_129 = arith.constant dense<0xFF800000> : vector<1xf32>
    %173 = vector.multi_reduction <maximumf>, %172, %cst_129 [1] : vector<1x128xf32> to vector<1xf32>
    %174 = vector.shape_cast %173 : vector<1xf32> to vector<1x1xf32>
    %175 = vector.broadcast %174 : vector<1x1xf32> to vector<1x128xf32>
    %176 = arith.subf %172, %175 : vector<1x128xf32>
    %177 = math.exp %176 : vector<1x128xf32>
    %cst_130 = arith.constant dense<0.000000e+00> : vector<1xf32>
    %178 = vector.multi_reduction <add>, %177, %cst_130 [1] : vector<1x128xf32> to vector<1xf32>
    %179 = vector.shape_cast %178 : vector<1xf32> to vector<1x1xf32>
    %180 = math.log %179 : vector<1x1xf32>
    %181 = arith.addf %180, %174 : vector<1x1xf32>
    %182 = vector.broadcast %181 : vector<1x1xf32> to vector<1x128xf32>
    %183 = arith.subf %172, %182 : vector<1x128xf32>
    %c0_131 = arith.constant 0 : index
    %c0_132 = arith.constant 0 : index
    %c0_133 = arith.constant 0 : index
    %184 = vector.load %arg15[%c0_131, %c0_132, %c0_133] : memref<1x1x128xf32, #tpu.memory_space<vmem>>, vector<1x1x128xf32>
    %185 = vector.shape_cast %184 : vector<1x1x128xf32> to vector<1x128xf32>
    %186 = vector.shape_cast %183 : vector<1x128xf32> to vector<1x1x128xf32>
    tpu.vector_store %arg15[%c0_131, %c0_132, %c0_133], %186 {strides = array<i32>} : memref<1x1x128xf32, #tpu.memory_space<vmem>>, vector<1x1x128xf32>,
    return
  }
  func.func @transform_1(%arg0: i32, %arg1: memref<6xi32, #tpu.memory_space<smem>>) -> (i32, i32) {
    %c0_i32 = arith.constant 0 : i32
    %c0_i32_0 = arith.constant 0 : i32
    %c0_i32_1 = arith.constant 0 : i32
    return %c0_i32, %c0_i32_0 : i32, i32
  }
  func.func @transform_2(%arg0: i32, %arg1: memref<6xi32, #tpu.memory_space<smem>>) -> (i32, i32) {
    %c0_i32 = arith.constant 0 : i32
    %c0_i32_0 = arith.constant 0 : i32
    %c0_i32_1 = arith.constant 0 : i32
    return %c0_i32, %c0_i32_0 : i32, i32
  }
  func.func @transform_3(%arg0: i32, %arg1: memref<6xi32, #tpu.memory_space<smem>>) -> (i32, i32) {
    %c0_i32 = arith.constant 0 : i32
    %c0_i32_0 = arith.constant 0 : i32
    %c0_i32_1 = arith.constant 0 : i32
    return %c0_i32, %c0_i32_0 : i32, i32
  }
  func.func @transform_4(%arg0: i32, %arg1: memref<6xi32, #tpu.memory_space<smem>>) -> (i32, i32) {
    %c0_i32 = arith.constant 0 : i32
    %c0_i32_0 = arith.constant 0 : i32
    %c0_i32_1 = arith.constant 0 : i32
    return %c0_i32, %c0_i32_0 : i32, i32
  }
  func.func @transform_5(%arg0: i32, %arg1: memref<6xi32, #tpu.memory_space<smem>>) -> (i32, i32) {
    %c0_i32 = arith.constant 0 : i32
    %c0_i32_0 = arith.constant 0 : i32
    %c0_i32_1 = arith.constant 0 : i32
    return %c0_i32, %c0_i32_0 : i32, i32
  }
  func.func @transform_6(%arg0: i32, %arg1: memref<6xi32, #tpu.memory_space<smem>>) -> (i32, i32) {
    %c0_i32 = arith.constant 0 : i32
    %c0_i32_0 = arith.constant 0 : i32
    %c0_i32_1 = arith.constant 0 : i32
    return %c0_i32, %c0_i32_0 : i32, i32
  }
  func.func @transform_7(%arg0: i32, %arg1: memref<6xi32, #tpu.memory_space<smem>>) -> (i32, i32, i32) {
    %c0_i32 = arith.constant 0 : i32
    %c0_i32_0 = arith.constant 0 : i32
    %c0_i32_1 = arith.constant 0 : i32
    %c0_i32_2 = arith.constant 0 : i32
    return %c0_i32, %c0_i32_0, %c0_i32_1 : i32, i32, i32
  }
  func.func @transform_8(%arg0: i32, %arg1: memref<6xi32, #tpu.memory_space<smem>>) -> (i32, i32, i32) {
    %c0_i32 = arith.constant 0 : i32
    %c0_i32_0 = arith.constant 0 : i32
    %c0_i32_1 = arith.constant 0 : i32
    %c0_i32_2 = arith.constant 0 : i32
    return %c0_i32, %c0_i32_0, %c0_i32_1 : i32, i32, i32
  }
  func.func @transform_9(%arg0: i32, %arg1: memref<6xi32, #tpu.memory_space<smem>>) -> (i32, i32, i32) {
    %c0_i32 = arith.constant 0 : i32
    %c0_i32_0 = arith.constant 0 : i32
    %c0_i32_1 = arith.constant 0 : i32
    %c0_i32_2 = arith.constant 0 : i32
    return %c0_i32, %c0_i32_0, %c0_i32_1 : i32, i32, i32
  }
  func.func @transform_10(%arg0: i32, %arg1: memref<6xi32, #tpu.memory_space<smem>>) -> (i32, i32, i32) {
    %c0_i32 = arith.constant 0 : i32
    %c0_i32_0 = arith.constant 0 : i32
    %c0_i32_1 = arith.constant 0 : i32
    %c0_i32_2 = arith.constant 0 : i32
    return %c0_i32, %c0_i32_0, %c0_i32_1 : i32, i32, i32
  }
  func.func @transform_11(%arg0: i32, %arg1: memref<6xi32, #tpu.memory_space<smem>>) -> (i32, i32) {
    %c0_i32 = arith.constant 0 : i32
    %c0_i32_0 = arith.constant 0 : i32
    %c0_i32_1 = arith.constant 0 : i32
    return %c0_i32, %c0_i32_0 : i32, i32
  }
  func.func @transform_12(%arg0: i32, %arg1: memref<6xi32, #tpu.memory_space<smem>>) -> (i32, i32) {
    %c0_i32 = arith.constant 0 : i32
    %c0_i32_0 = arith.constant 0 : i32
    %c0_i32_1 = arith.constant 0 : i32
    return %c0_i32, %c0_i32_0 : i32, i32
  }
  func.func @transform_13(%arg0: i32, %arg1: memref<6xi32, #tpu.memory_space<smem>>) -> (i32, i32, i32) {
    %c0_i32 = arith.constant 0 : i32
    %c0_i32_0 = arith.constant 0 : i32
    %c0_i32_1 = arith.constant 0 : i32
    return %arg0, %c0_i32, %c0_i32_0 : i32, i32, i32
  }
  func.func @transform_14(%arg0: i32, %arg1: memref<6xi32, #tpu.memory_space<smem>>) -> (i32, i32, i32) {
    %c0_i32 = arith.constant 0 : i32
    %c0_i32_0 = arith.constant 0 : i32
    %c0_i32_1 = arith.constant 0 : i32
    return %arg0, %c0_i32, %c0_i32_0 : i32, i32, i32
  }
  func.func @transform_15(%arg0: i32, %arg1: memref<6xi32, #tpu.memory_space<smem>>) -> (i32, i32, i32) {
    %c0_i32 = arith.constant 0 : i32
    %c0_i32_0 = arith.constant 0 : i32
    %c0_i32_1 = arith.constant 0 : i32
    return %arg0, %c0_i32, %c0_i32_0 : i32, i32, i32
  }
}

</mosaic_0001>

<bundles_post_ra>
// kernel: tpu_custom_call.1
= control target key start
LH: loop header
LB: loop body
LE: loop exit
PB: predicated region body
PF: predicated region fallthrough
CT: control target
= control target key end

     0   :  { %s2543_s21 = smov [#allocation6]   ;;  %s3156_s0 = inlined_call_operand.hbm [shape: s32[6], index: 0, kind: input, shape index: {}]   ;;  %s3157_s1 = inlined_call_operand.hbm [shape: f32[16,32], index: 1, kind: input, shape index: {}]   ;;  %s3158_s2 = inlined_call_operand.hbm [shape: f32[1,32], index: 2, kind: input, shape index: {}]   ;;  %s3159_s3 = inlined_call_operand.vmem [shape: bf16[128,32], index: 3, kind: input, shape index: {}]   ;;  %s3160_s4 = inlined_call_operand.vmem [shape: bf16[64,128], index: 4, kind: input, shape index: {}]   ;;  %s3161_s5 = inlined_call_operand.hbm [shape: f32[1,128], index: 5, kind: input, shape index: {}]   ;;  %s3162_s6 = inlined_call_operand.vmem [shape: bf16[64,32], index: 6, kind: input, shape index: {}]   ;;  %s3163_s7 = inlined_call_operand.hbm [shape: f32[1,32], index: 7, kind: input, shape index: {}]   ;;  %s3164_s8 = inlined_call_operand.vmem [shape: bf16[3,32,32], index: 8, kind: input, shape index: {}]   ;;  %s3165_s9 = inlined_call_operand.vmem [shape: bf16[3,32,32], index: 9, kind: input, shape index: {}]   ;;  %s3166_s10 = inlined_call_operand.hbm [shape: f32[3,1,32], index: 10, kind: input, shape index: {}]   ;;  %s3167_s11 = inlined_call_operand.vmem [shape: f32[3,1,32], index: 11, kind: input, shape index: {}]   ;;  %s3168_s12 = inlined_call_operand.vmem [shape: bf16[32,128], index: 12, kind: input, shape index: {}]   ;;  %s3169_s13 = inlined_call_operand.vmem [shape: f32[1,128], index: 13, kind: input, shape index: {}]   ;;  %s3170_s14 = inlined_call_operand.hbm [shape: f32[6,1,128], index: 14, kind: output, shape index: {0}]   ;;  %s3171_s15 = inlined_call_operand.hbm [shape: f32[6,1,32], index: 15, kind: output, shape index: {1}]   ;;  %s3172_s16 = inlined_call_operand.hbm [shape: f32[6,1,128], index: 16, kind: output, shape index: {2}]  }
   0x1   :  { %3182 = sst [smem:[#allocation34_spill]] %s3156_s0 }
   0x2   :  { %3183 = sst [smem:[#allocation35_spill]] %s3157_s1 }
   0x3   :  { %3184 = sst [smem:[#allocation36_spill]] %s3158_s2 }
   0x4   :  { %3185 = sst [smem:[#allocation37_spill]] %s3161_s5 }
   0x5   :  { %3186 = sst [smem:[#allocation38_spill]] %s3163_s7 }
   0x6   :  { %3187 = sst [smem:[#allocation39_spill]] %s3165_s9 }
   0x7   :  { %s3188_s9 = sld [smem:[#allocation34_spill]] }
   0xd   :  { %23 = dma.hbm_to_smem %s3188_s9, 16, %s2543_s21, [#allocation5] }
   0xe   :  { %2503 = dma.done.wait [#allocation5], 16 }
   0xf   :  { %2504 = vsyncadd [#allocation5], 4294967280 }
  0x10   :  { %25 = sfence }
  0x11   :  { %26 = vsyncpa [#allocation8], 0 }
  0x12   :  { %27 = vsyncpa [#allocation11], 0 }
  0x13   :  { %28 = vsyncpa [#allocation14], 0 }
  0x14   :  { %29 = vsyncpa [#allocation9], 0 }
  0x15   :  { %31 = vsyncpa [#allocation9 + $0x1], 0 }
  0x16   :  { %32 = vsyncpa [#allocation17], 0 }
  0x17   :  { %34 = vsyncpa [#allocation17 + $0x1], 0  ;;  %s2644_s24 = smov 0   ;;  %s2646_s25 = smov 0  }
  0x18   :  { %s2648_s26 = smov 0   ;;  %s2650_s27 = smov 0  }
  0x19 LB: > { %3189 = sst [smem:[#allocation30_spill]] %s2537_s26  ;;  %s2665_s9 = sadd.s32 4294967295, %s2541_s27   ;;  %s2541_s27 = sphi %s2650_s27, %s3216_s27   ;;  %s2537_s26 = sphi %s2648_s26, %s3218_s26   ;;  %s2533_s25 = sphi %s2646_s25, %s3220_s25   ;;  %s2529_s24 = sphi %s2644_s24, %s3219_s24  }
  0x1a   : > { %s3174_s28 = sadd.s32 4294967294, %s2541_s27   ;;  %s2669_s29 = sadd.s32 1, %s2541_s27  }
  0x1b   : > { %3190 = sst [smem:[#allocation31_spill]] %s2669_s29  ;;  %s299_s30 = sadd.s32 1, %s2537_s26 }
  0x1c   : > { %s296_s0 = ssub.s32 %s2541_s27, %s2669_s29  ;;  %p309_p0 = scmp.ne.s32.totalorder %s2537_s26, %s2533_s25 }
  0x1d   : > { %p297_p1 = scmp.eq.s32.totalorder %s296_s0, 0  ;;  %p310_p2 = scmp.eq.s32.totalorder %s2665_s9, 5 }
  0x1e   : > { %p315_p3 = scmp.ne.s32.totalorder %s2533_s25, %s2529_s24  ;;  %p316_p4 = scmp.eq.s32.totalorder %s3174_s28, 5 }
  0x1f   : > { %s2682_s17 = scalar_select %p297_p1, %s2537_s26, %s299_s30  }
  0x20   : > { %p2684_p5 = por %p310_p2, %p309_p0  ;;  %p2688_p6 = por %p316_p4, %p315_p3 }
  0x21   : > { %3191 = sst [smem:[#allocation32_spill]] %s2682_s17  ;;  %p1818_p7 = scmp.ge.s32.totalorder %s2541_s27, 1 }
  0x22   : > { %s3192_s18 = scalar_select %p2684_p5, 1, 0 }
  0x23   : > { %s3193_s19 = scalar_select %p2688_p6, 1, 0 }
  0x24   : > { %p375_p8 = scmp.lt.s32.totalorder %s2541_s27, 7  ;;  %p3178_p10 = scmp.eq.s32.totalorder %s2665_s9, 0 }
  0x25   : > { %3194 = sst [smem:[#allocation33_spill]] %s3193_s19  ;;  %s2544_s21 = smov [#allocation10]  }
  0x26   : > { %p2696_p11 = pnand %p1818_p7, %p375_p8  ;;  %s405_s22 = sshll.u32 %s2544_s21, 4  ;;  %s406_s22 = int_to_ptr.vmem [resolvable:$true] %s405_s22 }
  0x27   : > { %s2545_s23 = smov [#allocation7]   ;;  %s2546_s28 = smov [#allocation12]  }
  0x28   : > { %p2143_p12 = pneg %p2696_p11  ;;  %s388_s30 = sshll.u32 %s2545_s23, 4  ;;  %s389_s30 = int_to_ptr.vmem [resolvable:$true] %s388_s30 }
  0x29   : > { %s419_s17 = sshll.u32 %s2546_s28, 4  ;;  %s2294_s21 = scalar_lea.vmem %s406_s22, 16  ;;  %s2708_s17 = int_to_ptr.vmem [resolvable:$true] %s419_s17 }
  0x2a   : > { %p2704_p13 = pnand %p3178_p10, %p2143_p12  ;;  %p2295_p1 = scmp.ne.s32.totalorder %s406_s22, %s2294_s21 }
  0x2b   : > { %s2301_s23 = scalar_lea.vmem %s406_s22, 32  ;;  %p2302_p4 = scmp.lt.s32.totalorder %s406_s22, %s406_s22 }
  0x2c   : > { %p2285_p0 = pneg %p2704_p13  ;;  %p2303_p7 = scmp.lt.s32.totalorder %s2301_s23, %s2294_s21 }
  0x2e   : > { %p2297_p2 = pnand %p2295_p1, %p2285_p0  ;;  %p2304_p8 = por %p2303_p7, %p2302_p4 }
  0x30   : > { %p2298_p3 = pneg %p2297_p2 }
  0x32   : > { %p2305_p12 = pnand %p2304_p8, %p2298_p3 }
  0x34   : > { %2308 = shalt.err (!%p2305_p12)
}
  0x35   : > { %s3197_s5 = sld [smem:[#allocation37_spill]]  ;;  %s2320_s29 = scalar_lea.vmem %s389_s30, 16 }
  0x36   : > { %p2321_p9 = scmp.ne.s32.totalorder %s389_s30, %s2320_s29  ;;  %s2327_s19 = scalar_lea.vmem %s389_s30, 32 }
  0x37   : > { %p2328_p2 = scmp.lt.s32.totalorder %s389_s30, %s389_s30  ;;  %p2329_p6 = scmp.lt.s32.totalorder %s2327_s19, %s2320_s29 }
  0x38   : > { %p2323_p10 = pnand %p2321_p9, %p2285_p0 }
  0x39   : > { %p2330_p5 = por %p2329_p6, %p2328_p2 }
  0x3a   : > { %p2324_p1 = pneg %p2323_p10 }
  0x3b   : > { %2149 = dma.hbm_to_vmem [thread:$0]  (!%p2704_p13), %s3197_s5, 16, %s406_s22, [#allocation11]  }
  0x3c   : > { %p2331_p4 = pnand %p2330_p5, %p2324_p1 }
  0x3e   : > { %2334 = shalt.err (!%p2331_p4)
}
  0x3f   : > { %s3198_s2 = sld [smem:[#allocation36_spill]]  ;;  %s2346_s26 = scalar_lea.vmem %s2708_s17, 16 }
  0x40   : > { %p2347_p9 = scmp.ne.s32.totalorder %s2708_s17, %s2346_s26  ;;  %s2353_s29 = scalar_lea.vmem %s2708_s17, 32 }
  0x41   : > { %p2354_p5 = scmp.lt.s32.totalorder %s2708_s17, %s2708_s17  ;;  %p2355_p6 = scmp.lt.s32.totalorder %s2353_s29, %s2346_s26 }
  0x42   : > { %p2349_p10 = pnand %p2347_p9, %p2285_p0 }
  0x43   : > { %p2356_p7 = por %p2355_p6, %p2354_p5 }
  0x44   : > { %p2350_p3 = pneg %p2349_p10 }
  0x45   : > { %2146 = dma.hbm_to_vmem [thread:$0]  (!%p2704_p13), %s3198_s2, 16, %s389_s30, [#allocation8]  }
  0x46   : > { %p2357_p8 = pnand %p2356_p7, %p2350_p3 }
  0x48   : > { %2360 = shalt.err (!%p2357_p8)
}
  0x49   : > { %s3199_s7 = sld [smem:[#allocation38_spill]]  ;;  %s2547_s30 = smov [#allocation13]  }
  0x4a   : > { %s435_s28 = sshll.u32 %s2547_s30, 4  ;;  %s436_s28 = int_to_ptr.vmem [resolvable:$true] %s435_s28 }
  0x4b   : > { %s2372_s21 = scalar_lea.vmem %s436_s28, 48  ;;  %s2379_s23 = scalar_lea.vmem %s436_s28, 64 }
  0x4c   : > { %p2373_p12 = scmp.ne.s32.totalorder %s436_s28, %s2372_s21  ;;  %p2380_p4 = scmp.lt.s32.totalorder %s436_s28, %s436_s28 }
  0x4d   : > { %p2381_p9 = scmp.lt.s32.totalorder %s2379_s23, %s2372_s21 }
  0x4e   : > { %p2375_p1 = pnand %p2373_p12, %p2285_p0 }
  0x4f   : > { %2152 = dma.hbm_to_vmem [thread:$0]  (!%p2704_p13), %s3199_s7, 16, %s2708_s17, [#allocation11]  }
  0x50   : > { %p2376_p2 = pneg %p2375_p1  ;;  %p2382_p10 = por %p2381_p9, %p2380_p4 }
  0x52   : > { %p2383_p3 = pnand %p2382_p10, %p2376_p2 }
  0x54   : > { %2386 = shalt.err (!%p2383_p3)
}
  0x55   : > { %s2548_s26 = smov 16   ;;  %s2549_s29 = smov 1  }
  0x56   : > { %2155 = dma.hbm_to_vmem [thread:$0]  (!%p2704_p13), %s3166_s10, 48, %s436_s28, [#allocation14], %s2548_s26, %s2548_s26, %s2549_s29  }
  0x57   : > { %460 = sbr.rel (%p2696_p11) target bundleno = 2321 (0x911), region = 68  ;;  %p3200_p0 = scmp.eq.s32.totalorder (!%p2696_p11), %s2665_s9, 0 }
  0x5c   : > { %2506 = dma.done.wait (%p3200_p0), [#allocation8], 16   ;;  %p3201_p5 = pmov %p3200_p0 }
  0x5d   : > { %p3202_p6 = pmov %p3200_p0 }
  0x5e   : > { %2508 = vsyncadd (%p3201_p5), [#allocation8], 4294967280 }
  0x5f   : > { %2510 = dma.done.wait (%p3202_p6), [#allocation11], 32   ;;  %p3203_p7 = pmov %p3200_p0 }
  0x60   : > { %p3204_p8 = pmov %p3200_p0 }
  0x61   : > { %2512 = vsyncadd (%p3203_p7), [#allocation11], 4294967264 }
  0x62   : > { %2514 = dma.done.wait (%p3204_p8), [#allocation14], 48   ;;  %p3205_p13 = pmov %p3200_p0 }
  0x63   : > { %s2765_s20 = sand.u32 1, %s2533_s25   ;;  %s521_s0 = sld [smem:[#allocation6 + %s2665_s9]] }
  0x64   : > { %2516 = vsyncadd (%p3205_p13), [#allocation14], 4294967248  ;;  %s2550_s22 = smov [#allocation3]   ;;  %s3206_s1 = sld [smem:[#allocation35_spill]] }
  0x65   : > { %s531_s30 = sshll.u32 %s2550_s22, 4  ;;  %s532_s30 = int_to_ptr.vmem [resolvable:$true] %s531_s30 }
  0x69   : > { %s1828_s28 = sshll.u32 %s521_s0, 4 }
  0x6a   : > { %s523_s26 = scalar_lea.hbm %s3206_s1, %s1828_s28  ;;  %s2389_s2 = scalar_lea.hbm %s3206_s1, 256 }
  0x6b   : > { %s2387_s29 = scalar_lea.hbm %s523_s26, 16  ;;  %p2390_p12 = scmp.lt.s32.totalorder %s523_s26, %s3206_s1 }
  0x6c   : > { %p2388_p11 = scmp.ne.s32.totalorder %s523_s26, %s2387_s29  ;;  %p2391_p1 = scmp.lt.s32.totalorder %s2389_s2, %s2387_s29 }
  0x6e   : > { %p2392_p2 = por %p2391_p1, %p2390_p12 }
  0x70   : > { %p2393_p4 = pnand %p2392_p2, %p2388_p11 }
  0x72   : > { %2396 = shalt.err (!%p2393_p4)  }
  0x73   : > { %s2397_s22 = scalar_lea.vmem %s532_s30, 16  ;;  %p2402_p10 = scmp.lt.s32.totalorder %s532_s30, %s532_s30 }
  0x74   : > { %p2398_p9 = scmp.ne.s32.totalorder %s532_s30, %s2397_s22  ;;  %p2403_p3 = scmp.lt.s32.totalorder %s2397_s22, %s2397_s22 }
  0x76   : > { %p2404_p0 = por %p2403_p3, %p2402_p10 }
  0x78   : > { %p2405_p5 = pnand %p2404_p0, %p2398_p9 }
  0x7a   : > { %2408 = shalt.err (!%p2405_p5)  }
  0x7b   : > { %534 = dma.hbm_to_vmem [thread:$0]  %s523_s26, 16, %s532_s30, [#allocation4] }
  0x7c   : > { %s513_s28 = scalar_lea.vmem [#allocation16], %s2765_s20  ;;  %s3181_s21 = scalar_lea.vmem [#allocation18], %s2765_s20 }
  0x7d   : > { %p3207_p6 = scmp.ne.s32.totalorder %s2665_s9, 0 }
  0x7f   : > { %538 = sbr.rel (%p3207_p6) target bundleno = 134 (0x86), region = 92 }
  0x84   : > { %v539_v0 = vld [vmem:[#allocation7] sm:$0x1]  ;;  %vm540_vm0 = vcmask 253952  }
  0x85   : > { %541 = vst.msk [vmem:[#allocation2] sm:$0x1] %vm540_vm0, %v539_v0 }
  0x86 PF: > { %v2217_v1 = vld [vmem:[%s3160_s4 + $0x18] sm:$0xff]   ;;  %v2551_v2 = vmov 0.0   ;;  %v2218_v3 = vld [vmem:[%s3160_s4 + $0x10] sm:$0xff]   ;;  %vm2552_vm1 = vmmov 0   ;;  %vm560_vm2 = vcmask 261120  }
  0x87   : > { %1965 = vmatprep.subr.bf16.mxu0 %v2551_v2  ;;  %1969 = vmatprep.mubr.msk.bf16.mxu0 %vm2552_vm1, %v2551_v2 }
  0x88   : > { %1966 = vmatpush3.bf16.msra.mxu0 %v2217_v1 }
  0x89   : > { %1967 = vmatprep.subr.bf16.mxu0 %v2551_v2 }
  0x8c   : > { %v2791_v4 = vld [vmem:[#allocation2] sm:$0x1]  ;;  %1968 = vmatpush3.bf16.msra.mxu0 %v2218_v3 }
  0x8d   : > { %v2796_v5 = vpack.c.bf16 %v2791_v4, %v2791_v4 }
  0x8f   : > { %1970 = vmatmul.mubr.msk.bf16.vlgmr.msra.gmra.mxu0 %vm560_vm2, %v2796_v5 }
 0x14f   : > { %v598_v6 = vpop.f32.mrf.mxu0 }
 0x151   : > { %v1971_v7 = vpop.f32.mrf.mxu0 }
 0x153   : > { %v601_v8 = vpop.f32.mrf.mxu0 }
 0x155   : > { %v1972_v9 = vpop.f32.mrf.mxu0 }
 0x156   : > { %2517 = dma.done.wait [#allocation4], 16 }
 0x157   : > { %2518 = vsyncadd [#allocation4], 4294967280  ;;  %1973 = vmatprep.subr.bf16.mxu1 %v2551_v2  ;;  %1977 = vmatprep.mubr.msk.bf16.mxu1 %vm2552_vm1, %v2551_v2  ;;  %v2219_v10 = vld [vmem:[%s3160_s4 + $0x8] sm:$0xff]   ;;  %v2220_v11 = vld [vmem:[%s3160_s4] sm:$0xff]   ;;  %vm670_vm3 = vcmask 1040384   ;;  %s3208_s23 = sld [smem:[#allocation39_spill]] }
 0x158   : > { %1981 = vmatprep.subr.bf16.mxu0 %v2551_v2  ;;  %1997 = vmatprep.mubr.msk.bf16.mxu0 %vm2552_vm1, %v2551_v2  ;;  %v607_v12 = vld [vmem:[#allocation3] sm:$0x1]  ;;  %v668_v15 = vld [vmem:[#allocation10] sm:$0x1]  ;;  %v2221_v22 = vld [vmem:[%s3159_s3 + $0x38] sm:$0xff]   ;;  %vm1547_vm4 = vcmask 253952  }
 0x159   : > { %1974 = vmatpush3.bf16.msra.mxu1 %v2219_v10  ;;  %v2813_v13 = vpack.c.bf16 %v607_v12, %v607_v12  ;;  %1982 = vmatpush3.bf16.msra.mxu0 %v2221_v22  ;;  %v2222_v23 = vld [vmem:[%s3159_s3 + $0x30] sm:$0xff]   ;;  %v2223_v24 = vld [vmem:[%s3159_s3 + $0x28] sm:$0xff]   ;;  %v2224_v25 = vld [vmem:[%s3159_s3 + $0x20] sm:$0xff]   ;;  %s1629_s5 = sand.u32 1, %s2665_s9   ;;  %s3072_s7 = sshll.u32 %s2665_s9, 4 }
 0x15a   : > { %1975 = vmatprep.subr.bf16.mxu1 %v2551_v2  ;;  %1983 = vmatprep.subr.bf16.mxu0 %v2551_v2  ;;  %v2225_v31 = vld [vmem:[%s3159_s3 + $0x18] sm:$0xff]   ;;  %v2226_v32 = vld [vmem:[%s3159_s3 + $0x10] sm:$0xff]   ;;  %v2227_v33 = vld [vmem:[%s3159_s3 + $0x8] sm:$0xff]   ;;  %s1657_s29 = scalar_lea.hbm %s3171_s15, %s3072_s7  ;;  %s1659_s17 = sshll.u32 %s513_s28, 4  ;;  %s1660_s17 = int_to_ptr.vmem [resolvable:$true] %s1659_s17 }
 0x15b   : > { %v2228_v34 = vld [vmem:[%s3159_s3] sm:$0xff]   ;;  %v2229_v35 = vld [vmem:[%s3162_s6 + $0x18] sm:$0xff]   ;;  %v2230_v36 = vld [vmem:[%s3162_s6 + $0x10] sm:$0xff]   ;;  %s3080_s19 = scalar_lea.sflag [#allocation17], %s1629_s5  ;;  %s2409_s22 = scalar_lea.vmem %s1660_s17, 16 }
 0x15c   : > { %v2231_v42 = vld [vmem:[%s3162_s6 + $0x8] sm:$0xff]   ;;  %v2232_v46 = vld [vmem:[%s3162_s6] sm:$0xff]   ;;  %v2237_v0 = vld [vmem:[%s3164_s8 + $0x18] sm:$0xff]   ;;  %p2410_p7 = scmp.ne.s32.totalorder %s1660_s17, %s2409_s22  ;;  %p3209_p8 = scmp.ne.s32.totalorder %s3192_s18, 0 }
 0x15d   : > { %1976 = vmatpush3.bf16.msra.mxu1 %v2220_v11  ;;  %1984 = vmatpush3.bf16.msra.mxu0 %v2222_v23  ;;  %v2233_v48 = vld [vmem:[%s3164_s8 + $0x8] sm:$0xff]   ;;  %v2235_v50 = vld [vmem:[%s3164_s8] sm:$0xff]   ;;  %v2909_v1 = vld [vmem:[%s3208_s23 + $0x18] sm:$0xff]   ;;  %s2553_s2 = smov [#allocation16]  }
 0x15e   : > { %2001 = vmatprep.subr.bf16.mxu1 %v2551_v2  ;;  %1985 = vmatprep.subr.bf16.mxu0 %v2551_v2  ;;  %v2887_v49 = vld [vmem:[%s3164_s8 + $0x28] sm:$0xff]   ;;  %v2898_v51 = vld [vmem:[%s3164_s8 + $0x20] sm:$0xff]   ;;  %v2920_v7 = vld [vmem:[%s3208_s23 + $0x10] sm:$0xff]   ;;  %p2411_p13 = pnand %p2410_p7, %p3209_p8  ;;  %s2413_s0 = sshll.u32 %s2553_s2, 4  ;;  %s2414_s0 = int_to_ptr.vmem [resolvable:$false] %s2413_s0 }
 0x15f   : > { %v904_v57 = vld [vmem:[#allocation12] sm:$0x1]  ;;  %v2932_v8 = vld [vmem:[%s3208_s23 + $0x8] sm:$0xff]   ;;  %s2415_s9 = scalar_lea.vmem %s2414_s0, 32  ;;  %p2416_p12 = scmp.lt.s32.totalorder %s1660_s17, %s2414_s0 }
 0x160   : > { %1978 = vmatmul.mubr.msk.bf16.vlgmr.msra.gmra.mxu1 %vm560_vm2, %v2813_v13  ;;  %v2943_v9 = vld [vmem:[%s3208_s23] sm:$0xff]   ;;  %v2955_v10 = vld [vmem:[%s3208_s23 + $0x28] sm:$0xff]   ;;  %p2412_p11 = pneg %p2411_p13  ;;  %p2417_p1 = scmp.lt.s32.totalorder %s2415_s9, %s2409_s22 }
 0x161   : > { %2005 = vmatprep.mubr.msk.bf16.mxu1 %vm2552_vm1, %v2551_v2  ;;  %1986 = vmatpush3.bf16.msra.mxu0 %v2223_v24  ;;  %v2965_v11 = vld [vmem:[%s3208_s23 + $0x20] sm:$0xff]  }
 0x162   : > { %1987 = vmatprep.subr.bf16.mxu0 %v2551_v2  ;;  %2002 = vmatpush3.bf16.msra.mxu1 %v2229_v35  ;;  %p2418_p2 = por %p2417_p1, %p2416_p12 }
 0x163   : > { %2003 = vmatprep.subr.bf16.mxu1 %v2551_v2 }
 0x164   : > { %p2419_p4 = pnand %p2418_p2, %p2412_p11 }
 0x165   : > { %1988 = vmatpush3.bf16.msra.mxu0 %v2224_v25  ;;  %v2978_v25 = vld [vmem:[#allocation13] sm:$0x1] }
 0x166   : > { %1989 = vmatprep.subr.bf16.mxu0 %v2551_v2  ;;  %2004 = vmatpush3.bf16.msra.mxu1 %v2230_v36 }
 0x167   : > { %2009 = vmatprep.subr.bf16.mxu1 %v2551_v2 }
 0x169   : > { %1990 = vmatpush3.bf16.msra.mxu0 %v2225_v31 }
 0x16a   : > { %1991 = vmatprep.subr.bf16.mxu0 %v2551_v2 }
 0x16d   : > { %1992 = vmatpush3.bf16.msra.mxu0 %v2226_v32  ;;  %v2987_v32 = vld [vmem:[#allocation13 + $0x1] sm:$0x1] }
 0x16e   : > { %1993 = vmatprep.subr.bf16.mxu0 %v2551_v2 }
 0x171   : > { %1994 = vmatpush3.bf16.msra.mxu0 %v2227_v33  ;;  %v2992_v33 = vld [vmem:[%s3167_s11 + $0x1] sm:$0x1] }
 0x172   : > { %1995 = vmatprep.subr.bf16.mxu0 %v2551_v2 }
 0x175   : > { %1996 = vmatpush3.bf16.msra.mxu0 %v2228_v34 }
 0x176   : > { %2033 = vmatprep.subr.bf16.mxu0 %v2551_v2 }
 0x220   : > { %v662_v14 = vpop.f32.mrf.mxu1 }
 0x221   : > { %v663_v16 = vadd.f32 %v662_v14, %v598_v6  ;;  %v2239_v6 = vld [vmem:[%s3164_s8 + $0x10] sm:$0xff]  }
 0x222   : > { %v1979_v17 = vpop.f32.mrf.mxu1 }
 0x223   : > { %v669_v18 = vadd.f32 %v668_v15, %v663_v16 }
 0x224   : > { %v665_v19 = vpop.f32.mrf.mxu1 }
 0x225   : > { %v671_v20 = vsel %vm670_vm3, %v669_v18, -inf }
 0x226   : > { %672 = vmax.xlane.f32.xlu0 %v671_v20  ;;  %v1980_v21 = vpop.f32.mrf.mxu1 }
 0x2af   : > { %v673_v26 = vpop.xlane.xlu0 %672 }
 0x2b0   : > { %v674_v27 = vsub.f32 %v669_v18, %v673_v26 }
 0x2b2   : > { %v675_v28 = vmul.f32 1.442695, %v674_v27  ;;  %v2983_v27 = vld [vmem:[%s3167_s11] sm:$0x1] }
 0x2b4   : > { %2247 = vpow2.f32 %v675_v28 }
 0x2c1   : > { %v2248_v29 = vpop.eup %2247 }
 0x2c2   : > { %v677_v30 = vsel %vm670_vm3, %v2248_v29, 0.0 }
 0x2c3   : > { %678 = vadd.xlane.f32.xlu0 %v677_v30 }
 0x34c   : > { %v679_v37 = vpop.xlane.xlu0 %678 }
 0x34d   : > { %2249 = vrcp.f32 %v679_v37 }
 0x35a   : > { %v2250_v38 = vpop.eup %2249 }
 0x35b   : > { %v681_v39 = vmul.f32 %v2250_v38, %v2248_v29 }
 0x35d   : > { %682 = vst [vmem:[%s3181_s21] sm:$0x1] %v681_v39  ;;  %v683_v40 = vpack.c.bf16 %v681_v39, %v681_v39 }
 0x35f   : > { %1998 = vmatmul.mubr.bf16.vlgmr.msra.gmra.mxu0 %v683_v40 }
 0x360   : > { %2037 = vmatprep.mubr.msk.bf16.mxu0 %vm2552_vm1, %v2551_v2  ;;  %2034 = vmatpush3.bf16.msra.mxu0 %v2887_v49 }
 0x361   : > { %2035 = vmatprep.subr.bf16.mxu0 %v2551_v2 }
 0x364   : > { %2036 = vmatpush3.bf16.msra.mxu0 %v2898_v51 }
 0x365   : > { %2049 = vmatprep.subr.bf16.mxu0 %v2551_v2 }
 0x41f   : > { %v782_v41 = vpop.f32.mrf.mxu0 }
 0x420   : > { %v792_v43 = vpack.c.bf16 %v782_v41, %v782_v41 }
 0x421   : > { %v1999_v44 = vpop.f32.mrf.mxu0 }
 0x422   : > { %2006 = vmatmul.mubr.msk.bf16.vlgmr.msra.gmra.mxu1 %vm560_vm2, %v792_v43 }
 0x423   : > { %2010 = vmatpush3.bf16.msra.mxu1 %v2231_v42  ;;  %v785_v45 = vpop.f32.mrf.mxu0  ;;  %2013 = vmatprep.mubr.msk.bf16.mxu1 %vm2552_vm1, %v2551_v2 }
 0x424   : > { %2011 = vmatprep.subr.bf16.mxu1 %v2551_v2 }
 0x425   : > { %v2000_v47 = vpop.f32.mrf.mxu0 }
 0x427   : > { %2012 = vmatpush3.bf16.msra.mxu1 %v2232_v46 }
 0x428   : > { %2017 = vmatprep.subr.bf16.mxu1 %v2551_v2 }
 0x42a   : > { %2014 = vmatmul.mubr.msk.bf16.vlgmr.msra.gmra.mxu1 %vm560_vm2, %v2813_v13 }
 0x42b   : > { %2021 = vmatprep.mubr.msk.bf16.mxu1 %vm2552_vm1, %v2551_v2  ;;  %2018 = vmatpush3.bf16.msra.mxu1 %v2233_v48 }
 0x42c   : > { %2019 = vmatprep.subr.bf16.mxu1 %v2551_v2 }
 0x42f   : > { %2020 = vmatpush3.bf16.msra.mxu1 %v2235_v50 }
 0x430   : > { %2025 = vmatprep.subr.bf16.mxu1 %v2551_v2 }
 0x4e2   : > { %v846_v52 = vpop.f32.mrf.mxu1 }
 0x4e4   : > { %v2007_v53 = vpop.f32.mrf.mxu1 }
 0x4e6   : > { %v849_v54 = vpop.f32.mrf.mxu1 }
 0x4e8   : > { %v2008_v55 = vpop.f32.mrf.mxu1 }
 0x4e9   : > { %v3002_v55 = vld [vmem:[#allocation13 + $0x2] sm:$0x1] }
 0x4ea   : > { %v898_v56 = vpop.f32.mrf.mxu1 }
 0x4eb   : > { %v899_v58 = vadd.f32 %v898_v56, %v846_v52  ;;  %v2999_v52 = vld [vmem:[%s3167_s11 + $0x2] sm:$0x1] }
 0x4ec   : > { %v2015_v59 = vpop.f32.mrf.mxu1 }
 0x4ed   : > { %v905_v60 = vadd.f32 %v904_v57, %v899_v58 }
 0x4ee   : > { %v901_v61 = vpop.f32.mrf.mxu1 }
 0x4ef   : > { %v906_v62 = vmax.f32 %v905_v60, 0.0 }
 0x4f0   : > { %v2016_v63 = vpop.f32.mrf.mxu1 }
 0x4f1   : > { %v907_v3 = vpack.c.bf16 %v906_v62, %v906_v62 }
 0x4f3   : > { %2022 = vmatmul.mubr.msk.bf16.vlgmr.msra.gmra.mxu1 %vm560_vm2, %v907_v3  ;;  %2038 = vmatmul.mubr.msk.bf16.vlgmr.msra.gmra.mxu0 %vm560_vm2, %v907_v3 }
 0x4f4   : > { %2026 = vmatpush3.bf16.msra.mxu1 %v2237_v0  ;;  %2050 = vmatpush3.bf16.msra.mxu0 %v2909_v1 }
 0x4f5   : > { %2027 = vmatprep.subr.bf16.mxu1 %v2551_v2  ;;  %2051 = vmatprep.subr.bf16.mxu0 %v2551_v2 }
 0x4f6   : > { %2029 = vmatprep.mubr.msk.bf16.mxu1 %vm2552_vm1, %v2551_v2  ;;  %2053 = vmatprep.mubr.msk.bf16.mxu0 %vm2552_vm1, %v2551_v2 }
 0x4f8   : > { %2028 = vmatpush3.bf16.msra.mxu1 %v2239_v6  ;;  %2052 = vmatpush3.bf16.msra.mxu0 %v2920_v7 }
 0x4f9   : > { %2041 = vmatprep.subr.bf16.mxu1 %v2551_v2  ;;  %2065 = vmatprep.subr.bf16.mxu0 %v2551_v2 }
 0x4fb   : > { %2030 = vmatmul.mubr.msk.bf16.vlgmr.msra.gmra.mxu1 %vm560_vm2, %v907_v3  ;;  %2054 = vmatmul.mubr.msk.bf16.vlgmr.msra.gmra.mxu0 %vm560_vm2, %v2796_v5 }
 0x4fc   : > { %2042 = vmatpush3.bf16.msra.mxu1 %v2932_v8  ;;  %2045 = vmatprep.mubr.msk.bf16.mxu1 %vm2552_vm1, %v2551_v2 }
 0x4fd   : > { %2043 = vmatprep.subr.bf16.mxu1 %v2551_v2  ;;  %2066 = vmatpush3.bf16.msra.mxu0 %v2233_v48 }
 0x4fe   : > { %2067 = vmatprep.subr.bf16.mxu0 %v2551_v2  ;;  %2069 = vmatprep.mubr.msk.bf16.mxu0 %vm2552_vm1, %v2551_v2 }
 0x500   : > { %2044 = vmatpush3.bf16.msra.mxu1 %v2943_v9 }
 0x501   : > { %2057 = vmatprep.subr.bf16.mxu1 %v2551_v2  ;;  %2068 = vmatpush3.bf16.msra.mxu0 %v2235_v50 }
 0x502   : > { %2081 = vmatprep.subr.bf16.mxu0 %v2551_v2 }
 0x503   : > { %2046 = vmatmul.mubr.msk.bf16.vlgmr.msra.gmra.mxu1 %vm560_vm2, %v2796_v5 }
 0x504   : > { %2058 = vmatpush3.bf16.msra.mxu1 %v2955_v10  ;;  %2061 = vmatprep.mubr.msk.bf16.mxu1 %vm2552_vm1, %v2551_v2 }
 0x505   : > { %2059 = vmatprep.subr.bf16.mxu1 %v2551_v2 }
 0x508   : > { %2060 = vmatpush3.bf16.msra.mxu1 %v2965_v11 }
 0x509   : > { %2073 = vmatprep.subr.bf16.mxu1 %v2551_v2 }
 0x50b   : > { %2062 = vmatmul.mubr.msk.bf16.vlgmr.msra.gmra.mxu1 %vm560_vm2, %v2796_v5 }
 0x50c   : > { %2074 = vmatpush3.bf16.msra.mxu1 %v2237_v0  ;;  %2077 = vmatprep.mubr.msk.bf16.mxu1 %vm2552_vm1, %v2551_v2 }
 0x50d   : > { %2075 = vmatprep.subr.bf16.mxu1 %v2551_v2 }
 0x510   : > { %2076 = vmatpush3.bf16.msra.mxu1 %v2239_v6 }
 0x511   : > { %2089 = vmatprep.subr.bf16.mxu1 %v2551_v2 }
 0x5b3   : > { %v962_v12 = vpop.f32.mrf.mxu1  ;;  %v1080_v13 = vpop.f32.mrf.mxu0 }
 0x5b4   : > { %v963_v30 = vadd.f32 %v962_v12, %v2978_v25  ;;  %v1081_v57 = vadd.f32 %v1080_v13, %v3002_v55 }
 0x5b5   : > { %v2023_v14 = vpop.f32.mrf.mxu1  ;;  %v2039_v15 = vpop.f32.mrf.mxu0 }
 0x5b7   : > { %v965_v16 = vpop.f32.mrf.mxu1  ;;  %v1083_v17 = vpop.f32.mrf.mxu0 }
 0x5b9   : > { %v2024_v18 = vpop.f32.mrf.mxu1  ;;  %v2040_v19 = vpop.f32.mrf.mxu0 }
 0x5bb   : > { %v1021_v20 = vpop.f32.mrf.mxu1  ;;  %v1196_v21 = vpop.f32.mrf.mxu0 }
 0x5bc   : > { %v1022_v37 = vadd.f32 %v1021_v20, %v2987_v32  ;;  %v1197_v38 = vadd.f32 %v2992_v33, %v1196_v21 }
 0x5bd   : > { %v2031_v5 = vpop.f32.mrf.mxu1  ;;  %v2055_v22 = vpop.f32.mrf.mxu0 }
 0x5be   : > { %v1268_v42 = vadd.f32 %v1197_v38, %v1022_v37 }
 0x5bf   : > { %v1024_v23 = vpop.f32.mrf.mxu1  ;;  %v1199_v24 = vpop.f32.mrf.mxu0 }
 0x5c0   : > { %v1887_v45 = vmul.f32 -1.442695, %v1268_v42 }
 0x5c1   : > { %v2032_v26 = vpop.f32.mrf.mxu1  ;;  %v2056_v28 = vpop.f32.mrf.mxu0 }
 0x5c3   : > { %v1137_v29 = vpop.f32.mrf.mxu1 }
 0x5c4   : > { %v1138_v31 = vadd.f32 %v1137_v29, %v2983_v27 }
 0x5c5   : > { %v2047_v34 = vpop.f32.mrf.mxu1 }
 0x5c6   : > { %v1261_v35 = vadd.f32 %v1138_v31, %v963_v30 }
 0x5c7   : > { %v1140_v36 = vpop.f32.mrf.mxu1 }
 0x5c8   : > { %v1886_v39 = vmul.f32 -1.442695, %v1261_v35 }
 0x5c9   : > { %v2048_v40 = vpop.f32.mrf.mxu1 }
 0x5ca   : > { %2251 = vpow2.f32 %v1886_v39 }
 0x5cb   : > { %v1255_v41 = vpop.f32.mrf.mxu1  ;;  %2253 = vpow2.f32 %v1887_v45 }
 0x5cc   : > { %v1256_v54 = vadd.f32 %v2999_v52, %v1255_v41 }
 0x5cd   : > { %v2063_v43 = vpop.f32.mrf.mxu1 }
 0x5cf   : > { %v1258_v44 = vpop.f32.mrf.mxu1 }
 0x5d1   : > { %v2064_v46 = vpop.f32.mrf.mxu1 }
 0x5d7   : > { %v2252_v47 = vpop.eup %2251 }
 0x5d8   : > { %v1265_v48 = vadd.f32 1.0, %v2252_v47  ;;  %v2254_v50 = vpop.eup %2253 }
 0x5d9   : > { %v1272_v53 = vadd.f32 1.0, %v2254_v50 }
 0x5da   : > { %2255 = vrcp.f32 %v1265_v48 }
 0x5db   : > { %2257 = vrcp.f32 %v1272_v53 }
 0x5e7   : > { %v2256_v56 = vpop.eup %2255 }
 0x5e8   : > { %v1275_v58 = vmul.f32 %v2256_v56, %v1256_v54  ;;  %v2258_v60 = vpop.eup %2257 }
 0x5e9   : > { %v1278_v61 = vsub.f32 1.0, %v2258_v60  ;;  %v1280_v0 = vmul.f32 %v2258_v60, %v2791_v4  ;;  %v2245_v4 = vld [vmem:[%s3168_s12 + $0x8] sm:$0xff]  }
 0x5ea   : > { %v1276_v59 = vadd.f32 %v1275_v58, %v1081_v57 }
 0x5ec   : > { %2259 = vtanh.f32 %v1276_v59 }
 0x5f9   : > { %v2260_v62 = vpop.eup %2259 }
 0x5fa   : > { %v1279_v63 = vmul.f32 %v2260_v62, %v1278_v61 }
 0x5fc   : > { %v3006_v3 = vadd.f32 %v1280_v0, %v1279_v63 }
 0x5fe   : > { %v1282_v6 = vpack.c.bf16 %v3006_v3, %v3006_v3 }
 0x600   : > { %2070 = vmatmul.mubr.msk.bf16.vlgmr.msra.gmra.mxu0 %vm560_vm2, %v1282_v6  ;;  %2078 = vmatmul.mubr.msk.bf16.vlgmr.msra.gmra.mxu1 %vm560_vm2, %v1282_v6 }
 0x601   : > { %2090 = vmatpush3.bf16.msra.mxu1 %v2932_v8  ;;  %2082 = vmatpush3.bf16.msra.mxu0 %v2887_v49  ;;  %v2246_v49 = vld [vmem:[%s3168_s12] sm:$0xff]  }
 0x602   : > { %2091 = vmatprep.subr.bf16.mxu1 %v2551_v2  ;;  %2083 = vmatprep.subr.bf16.mxu0 %v2551_v2 }
 0x603   : > { %2085 = vmatprep.mubr.msk.bf16.mxu0 %vm2552_vm1, %v2551_v2  ;;  %2093 = vmatprep.mubr.msk.bf16.mxu1 %vm2552_vm1, %v2551_v2 }
 0x605   : > { %2092 = vmatpush3.bf16.msra.mxu1 %v2943_v9  ;;  %2084 = vmatpush3.bf16.msra.mxu0 %v2898_v51 }
 0x606   : > { %2097 = vmatprep.subr.bf16.mxu0 %v2551_v2  ;;  %2105 = vmatprep.subr.bf16.mxu1 %v2551_v2 }
 0x608   : > { %2086 = vmatmul.mubr.msk.bf16.vlgmr.msra.gmra.mxu0 %vm560_vm2, %v1282_v6  ;;  %2094 = vmatmul.mubr.msk.bf16.vlgmr.msra.gmra.mxu1 %vm560_vm2, %v1282_v6 }
 0x609   : > { %2098 = vmatpush3.bf16.msra.mxu0 %v2909_v1  ;;  %2106 = vmatpush3.bf16.msra.mxu1 %v2955_v10 }
 0x60a   : > { %2099 = vmatprep.subr.bf16.mxu0 %v2551_v2  ;;  %2107 = vmatprep.subr.bf16.mxu1 %v2551_v2 }
 0x60b   : > { %2101 = vmatprep.mubr.msk.bf16.mxu0 %vm2552_vm1, %v2551_v2  ;;  %2109 = vmatprep.mubr.msk.bf16.mxu1 %vm2552_vm1, %v2551_v2 }
 0x60d   : > { %2100 = vmatpush3.bf16.msra.mxu0 %v2920_v7  ;;  %2108 = vmatpush3.bf16.msra.mxu1 %v2965_v11 }
 0x60e   : > { %2113 = vmatprep.subr.bf16.mxu0 %v2551_v2 }
 0x610   : > { %2102 = vmatmul.mubr.msk.bf16.vlgmr.msra.gmra.mxu0 %vm560_vm2, %v1282_v6  ;;  %2110 = vmatmul.mubr.msk.bf16.vlgmr.msra.gmra.mxu1 %vm560_vm2, %v1282_v6 }
 0x611   : > { %2117 = vmatprep.mubr.msk.bf16.mxu0 %vm2552_vm1, %v2551_v2  ;;  %2114 = vmatpush3.bf16.msra.mxu0 %v2245_v4 }
 0x612   : > { %2115 = vmatprep.subr.bf16.mxu0 %v2551_v2 }
 0x615   : > { %2116 = vmatpush3.bf16.msra.mxu0 %v2246_v49 }
 0x6c0   : > { %v1320_v51 = vpop.f32.mrf.mxu0  ;;  %v1360_v1 = vpop.f32.mrf.mxu1 }
 0x6c1   : > { %v1321_v15 = vadd.f32 %v1320_v51, %v2978_v25  ;;  %v1361_v26 = vadd.f32 %v1360_v1, %v2987_v32 }
 0x6c2   : > { %v2071_v7 = vpop.f32.mrf.mxu0  ;;  %v2079_v8 = vpop.f32.mrf.mxu1 }
 0x6c4   : > { %v1323_v9 = vpop.f32.mrf.mxu0  ;;  %v1363_v10 = vpop.f32.mrf.mxu1 }
 0x6c6   : > { %v2072_v11 = vpop.f32.mrf.mxu0  ;;  %v2080_v12 = vpop.f32.mrf.mxu1 }
 0x6c8   : > { %v1400_v13 = vpop.f32.mrf.mxu0  ;;  %v1440_v14 = vpop.f32.mrf.mxu1 }
 0x6c9   : > { %v1441_v16 = vadd.f32 %v1440_v14, %v2983_v27 }
 0x6ca   : > { %v2087_v17 = vpop.f32.mrf.mxu0  ;;  %v2095_v18 = vpop.f32.mrf.mxu1 }
 0x6cb   : > { %v1526_v19 = vadd.f32 %v1441_v16, %v1321_v15 }
 0x6cc   : > { %v1403_v20 = vpop.f32.mrf.mxu0  ;;  %v1443_v2 = vpop.f32.mrf.mxu1 }
 0x6cd   : > { %v1894_v21 = vmul.f32 -1.442695, %v1526_v19 }
 0x6ce   : > { %v2088_v5 = vpop.f32.mrf.mxu0  ;;  %v2096_v22 = vpop.f32.mrf.mxu1 }
 0x6cf   : > { %2261 = vpow2.f32 %v1894_v21 }
 0x6d0   : > { %v1480_v23 = vpop.f32.mrf.mxu0  ;;  %v1520_v24 = vpop.f32.mrf.mxu1 }
 0x6d1   : > { %v1481_v28 = vadd.f32 %v2992_v33, %v1480_v23  ;;  %v1521_v41 = vadd.f32 %v2999_v52, %v1520_v24  ;;  %v1401_v33 = vadd.f32 %v1400_v13, %v3002_v55  ;;  %v1555_v52 = vld [vmem:[%s3169_s13] sm:$0x1] }
 0x6d2   : > { %v2103_v29 = vpop.f32.mrf.mxu0  ;;  %v2111_v30 = vpop.f32.mrf.mxu1 }
 0x6d3   : > { %v1533_v25 = vadd.f32 %v1481_v28, %v1361_v26 }
 0x6d4   : > { %v1483_v31 = vpop.f32.mrf.mxu0  ;;  %v1523_v27 = vpop.f32.mrf.mxu1 }
 0x6d5   : > { %v1895_v34 = vmul.f32 -1.442695, %v1533_v25 }
 0x6d6   : > { %v2104_v35 = vpop.f32.mrf.mxu0  ;;  %v2112_v36 = vpop.f32.mrf.mxu1 }
 0x6d7   : > { %2263 = vpow2.f32 %v1895_v34 }
 0x6dc   : > { %v2262_v37 = vpop.eup %2261 }
 0x6dd   : > { %v1530_v38 = vadd.f32 1.0, %v2262_v37 }
 0x6df   : > { %2265 = vrcp.f32 %v1530_v38 }
 0x6e4   : > { %v2264_v39 = vpop.eup %2263 }
 0x6e5   : > { %v1537_v40 = vadd.f32 1.0, %v2264_v39 }
 0x6e7   : > { %2267 = vrcp.f32 %v1537_v40 }
 0x6ec   : > { %v2266_v32 = vpop.eup %2265 }
 0x6ed   : > { %v1540_v42 = vmul.f32 %v2266_v32, %v1521_v41 }
 0x6ef   : > { %v1541_v43 = vadd.f32 %v1540_v42, %v1401_v33 }
 0x6f1   : > { %2269 = vtanh.f32 %v1541_v43 }
 0x6f4   : > { %v2268_v44 = vpop.eup %2267 }
 0x6f5   : > { %v1543_v45 = vsub.f32 1.0, %v2268_v44  ;;  %v1545_v48 = vmul.f32 %v2268_v44, %v3006_v3 }
 0x6fe   : > { %v2270_v46 = vpop.eup %2269 }
 0x6ff   : > { %v1544_v47 = vmul.f32 %v2270_v46, %v1543_v45 }
 0x701   : > { %v1546_v50 = vadd.f32 %v1545_v48, %v1544_v47 }
 0x703   : > { %v1550_v53 = vpack.c.bf16 %v1546_v50, %v1546_v50  ;;  %1548 = vst.msk [vmem:[#allocation2] sm:$0x1] %vm1547_vm4, %v1546_v50  ;;  %1549 = vst.msk [vmem:[%s513_s28] sm:$0x1] %vm1547_vm4, %v1546_v50 }
 0x705   : > { %2118 = vmatmul.mubr.msk.bf16.vlgmr.msra.gmra.mxu0 %vm560_vm2, %v1550_v53 }
 0x7c5   : > { %v1605_v54 = vpop.f32.mrf.mxu0 }
 0x7c6   : > { %v3061_v55 = vadd.f32 %v1605_v54, %v1555_v52 }
 0x7c7   : > { %v2119_v56 = vpop.f32.mrf.mxu0 }
 0x7c8   : > { %v1611_v57 = vsel %vm670_vm3, %v3061_v55, -inf }
 0x7c9   : > { %1612 = vmax.xlane.f32.xlu1 %v1611_v57  ;;  %v1608_v58 = vpop.f32.mrf.mxu0 }
 0x7cb   : > { %v2120_v59 = vpop.f32.mrf.mxu0 }
 0x852   : > { %v3065_v60 = vpop.xlane.xlu1 %1612 }
 0x853   : > { %v1614_v61 = vsub.f32 %v3061_v55, %v3065_v60 }
 0x855   : > { %v1615_v62 = vmul.f32 1.442695, %v1614_v61 }
 0x857   : > { %2271 = vpow2.f32 %v1615_v62 }
 0x864   : > { %v2272_v63 = vpop.eup %2271 }
 0x865   : > { %v1617_v0 = vsel %vm670_vm3, %v2272_v63, 0.0 }
 0x866   : > { %1618 = vadd.xlane.f32.xlu1 %v1617_v0 }
 0x867   : > { %2422 = shalt.err (!%p2419_p4)
}
 0x868   : > { %s2423_s30 = scalar_lea.hbm %s1657_s29, 16  ;;  %s2427_s26 = scalar_lea.hbm %s3171_s15, 96 }
 0x869   : > { %p2424_p9 = scmp.ne.s32.totalorder %s1657_s29, %s2423_s30  ;;  %p2428_p0 = scmp.lt.s32.totalorder %s1657_s29, %s3171_s15 }
 0x86a   : > { %p2429_p5 = scmp.lt.s32.totalorder %s2427_s26, %s2423_s30 }
 0x86b   : > { %p2425_p10 = pnand %p2424_p9, %p3209_p8 }
 0x86c   : > { %p2430_p6 = por %p2429_p5, %p2428_p0 }
 0x86d   : > { %p2426_p3 = pneg %p2425_p10 }
 0x86f   : > { %p2431_p7 = pnand %p2430_p6, %p2426_p3 }
 0x871   : > { %2434 = shalt.err (!%p2431_p7)
}
 0x872   : > { %2138 = dma.vmem_to_hbm [thread:$0]  (%p3209_p8), %s1660_s17, 16, %s1657_s29, %s3080_s19  }
 0x873   : > { %s1670_s2 = scalar_lea.hbm %s3172_s16, %s3072_s7  ;;  %s3210_s9 = scalar_lea.vmem [#allocation18], %s2765_s20 }
 0x874   : > { %s1672_s28 = sshll.u32 %s3210_s9, 4  ;;  %s2554_s21 = smov [#allocation18]   ;;  %s1673_s28 = int_to_ptr.vmem [resolvable:$true] %s1672_s28 }
 0x875   : > { %s2435_s1 = scalar_lea.vmem %s1673_s28, 16  ;;  %s2439_s30 = sshll.u32 %s2554_s21, 4  ;;  %s2440_s30 = int_to_ptr.vmem [resolvable:$false] %s2439_s30 }
 0x876   : > { %p2436_p13 = scmp.ne.s32.totalorder %s1673_s28, %s2435_s1  ;;  %s2441_s5 = scalar_lea.vmem %s2440_s30, 32 }
 0x877   : > { %p2442_p1 = scmp.lt.s32.totalorder %s1673_s28, %s2440_s30  ;;  %p2443_p2 = scmp.lt.s32.totalorder %s2441_s5, %s2435_s1 }
 0x878   : > { %p2437_p11 = pnand %p2436_p13, %p3209_p8 }
 0x879   : > { %p2444_p4 = por %p2443_p2, %p2442_p1 }
 0x87a   : > { %p2438_p12 = pneg %p2437_p11 }
 0x87c   : > { %p2445_p9 = pnand %p2444_p4, %p2438_p12 }
 0x87e   : > { %2448 = shalt.err (!%p2445_p9)
}
 0x87f   : > { %s2449_s29 = scalar_lea.hbm %s1670_s2, 16  ;;  %s2453_s0 = scalar_lea.hbm %s3172_s16, 96 }
 0x880   : > { %p2450_p10 = scmp.ne.s32.totalorder %s1670_s2, %s2449_s29  ;;  %p2454_p5 = scmp.lt.s32.totalorder %s1670_s2, %s3172_s16 }
 0x881   : > { %p2455_p6 = scmp.lt.s32.totalorder %s2453_s0, %s2449_s29 }
 0x882   : > { %p2451_p3 = pnand %p2450_p10, %p3209_p8 }
 0x883   : > { %p2456_p7 = por %p2455_p6, %p2454_p5 }
 0x884   : > { %p2452_p0 = pneg %p2451_p3 }
 0x886   : > { %p2457_p13 = pnand %p2456_p7, %p2452_p0 }
 0x888   : > { %2460 = shalt.err (!%p2457_p13)
}
 0x889   : > { %2139 = dma.vmem_to_hbm [thread:$0]  (%p3209_p8), %s1673_s28, 16, %s1670_s2, %s3080_s19  }
 0x88a   : > { %s3211_s1 = scalar_lea.vmem [#allocation15], %s2765_s20  ;;  %s1644_s29 = scalar_lea.hbm %s3170_s14, %s3072_s7 }
 0x88b   : > { %s1646_s21 = sshll.u32 %s3211_s1, 4  ;;  %s3212_s17 = smov %s3211_s1  ;;  %s1647_s21 = int_to_ptr.vmem [resolvable:$true] %s1646_s21 }
 0x88c   : > { %s1626_s26 = scalar_lea.sflag [#allocation9], %s2765_s20  ;;  %s2461_s0 = scalar_lea.vmem %s1647_s21, 16 }
 0x88d   : > { %p2462_p11 = scmp.ne.s32.totalorder %s1647_s21, %s2461_s0  ;;  %s2555_s19 = smov [#allocation15]  }
 0x88e   : > { %s2465_s2 = sshll.u32 %s2555_s19, 4  ;;  %s2466_s2 = int_to_ptr.vmem [resolvable:$false] %s2465_s2 }
 0x88f   : > { %p2463_p12 = pnand %p2462_p11, %p3209_p8  ;;  %s2467_s28 = scalar_lea.vmem %s2466_s2, 32 }
 0x890   : > { %p2468_p2 = scmp.lt.s32.totalorder %s1647_s21, %s2466_s2  ;;  %p2469_p4 = scmp.lt.s32.totalorder %s2467_s28, %s2461_s0 }
 0x891   : > { %p2464_p1 = pneg %p2463_p12 }
 0x892   : > { %p2470_p9 = por %p2469_p4, %p2468_p2 }
 0x894   : > { %p2471_p10 = pnand %p2470_p9, %p2464_p1 }
 0x8ef   : > { %v1619_v3 = vpop.xlane.xlu1 %1618 }
 0x8f0   : > { %2273 = vlog2.f32 %v1619_v3 }
 0x8fd   : > { %v2274_v6 = vpop.eup %2273 }
 0x8fe   : > { %v1621_v4 = vmul.f32 0.6931472, %v2274_v6 }
 0x900   : > { %v1622_v49 = vadd.f32 %v1621_v4, %v3065_v60 }
 0x902   : > { %v1623_v51 = vsub.f32 %v3061_v55, %v1622_v49 }
 0x904   : > { %1624 = vst [vmem:[%s3212_s17] sm:$0x1] %v1623_v51 }
 0x905   : > { %2474 = shalt.err (!%p2471_p10)
}
 0x906   : > { %s2475_s22 = scalar_lea.hbm %s1644_s29, 16  ;;  %s2479_s9 = scalar_lea.hbm %s3170_s14, 96 }
 0x907   : > { %p2476_p3 = scmp.ne.s32.totalorder %s1644_s29, %s2475_s22  ;;  %p2480_p6 = scmp.lt.s32.totalorder %s1644_s29, %s3170_s14 }
 0x908   : > { %p2481_p7 = scmp.lt.s32.totalorder %s2479_s9, %s2475_s22 }
 0x909   : > { %p2477_p0 = pnand %p2476_p3, %p3209_p8 }
 0x90a   : > { %p2482_p13 = por %p2481_p7, %p2480_p6 }
 0x90b   : > { %p2478_p5 = pneg %p2477_p0 }
 0x90d   : > { %p2483_p11 = pnand %p2482_p13, %p2478_p5 }
 0x90f   : > { %2486 = shalt.err (!%p2483_p11)
}
 0x910   : > { %2137 = dma.vmem_to_hbm [thread:$0]  (%p3209_p8), %s1647_s21, 16, %s1644_s29, %s1626_s26  }
 0x911 PF: > { %s3213_s5 = sld [smem:[#allocation33_spill]]  ;;  %p2174_p12 = scmp.ge.s32.totalorder %s2541_s27, 2 }
 0x912   : > { %s1684_s17 = sand.u32 1, %s2529_s24  }
 0x913   : > { %s1685_s0 = scalar_lea.sflag [#allocation9], %s1684_s17 }
 0x917   : > { %p3214_p1 = scmp.ne.s32.totalorder %s3213_s5, 0 }
 0x919   : > { %p2157_p2 = pnand %p2174_p12, %p3214_p1 }
 0x91b   : > { %p2158_p4 = pneg %p2157_p2 }
 0x91d   : > { %2520 = dma.done.wait (%p2158_p4), %s1685_s0, 16  }
 0x91e   : > { %2522 = vsyncadd (%p2158_p4), %s1685_s0, 4294967280  ;;  %s3215_s19 = sadd.s32 4294967294, %s2541_s27  }
 0x91f   : > { %s1692_s2 = sand.u32 1, %s3215_s19  }
 0x920   : > { %s1693_s28 = scalar_lea.sflag [#allocation17], %s1692_s2 }
 0x921   : > { %2524 = dma.done.wait (%p2158_p4), %s1693_s28, 32  }
 0x922   : > { %2526 = vsyncadd (%p2158_p4), %s1693_s28, 4294967264  ;;  %s3216_s27 = sld [smem:[#allocation31_spill]]  ;;  %s3219_s24 = smov %s2533_s25 }
 0x923   : > { %s3217_s18 = sld [smem:[#allocation30_spill]] }
 0x924   : > { %s3218_s26 = sld [smem:[#allocation32_spill]] }
 0x928   : > { %p37_p8 = scmp.ge.s32.totalorder %s3216_s27, 8  }
 0x929   : > { %s3220_s25 = smov %s3217_s18 }
 0x92a   :  { %39 = sbr.rel (!%p37_p8) target bundleno = 25 (0x19), region = 166 }
 0x92f   :  { %1705 = vsyncpa [#allocation8], 1 }
 0x930   :  { %1707 = vsyncpa [#allocation8 + $0x1], 1 }
 0x931   :  { %1708 = vsyncpa [#allocation11], 1 }
 0x932   :  { %1709 = vsyncpa [#allocation14], 1 }
 0x933   :  { %1710 = vsyncpa [#allocation9], 1 }
 0x934   :  { %1712 = vsyncpa [#allocation9 + $0x1], 1 }
 0x935   :  { %1713 = vsyncpa [#allocation17], 1 }
 0x936   :  { %1715 = vsyncpa [#allocation17 + $0x1], 1 }
 0x937   :  { %1716 = vsyncmov [#allocation4] }
 0x93a   :  { %s1717_s21 = vpop.sfrf %1716 }
 0x93b   :  { %p1904_p9 = scmp.ne.s32.totalorder %s1717_s21, 0 }
 0x93d   :  { %1721 = shalt.err (%p1904_p9)  }

</bundles_post_ra>
